<compile_context>
chip_gen: v7x
topology: tpu7x:2x2x1
jax: 0.10.0
libtpu: 0.0.40
codegen_flags: <defaults>
</compile_context>

<pallas_src>
import functools

import jax
import jax.numpy as jnp
from jax.experimental import pallas as pl
from jax.experimental.pallas import tpu as pltpu


# ---------------------------------------------------------------------------
# Kernel
# ---------------------------------------------------------------------------
def make_vae_branch_kernel(n_enc, n_dec, compute_dtype):
    """Fused encoder->reparameterize->decoder kernel for one batch tile.

    Ref order: x, eps, then (w, b) pairs for: n_enc encoder layers, mu head,
    sigma head, n_dec decoder layers, followed by the output ref.
    """

    def kernel(x_ref, eps_ref, *refs):
        o_ref = refs[-1]
        wb = refs[:-1]

        def linear(h_lo, w_ref, b_ref):
            # MXU matmul (bf16 x bf16 -> f32 accumulation); bias add in f32 on the VPU.
            return (
                jnp.dot(h_lo, w_ref[...], preferred_element_type=jnp.float32)
                + b_ref[...]
            )

        idx = 0
        h = x_ref[...]  # already compute_dtype (bf16)

        # Encoder: Linear + ReLU stack.
        for _ in range(n_enc):
            h = jnp.maximum(linear(h, wb[idx], wb[idx + 1]), 0.0).astype(compute_dtype)
            idx += 2

        # mu / sigma heads + reparameterization (all in f32; exp runs on the EUP).
        mu = linear(h, wb[idx], wb[idx + 1])
        idx += 2
        sigma = jnp.exp(linear(h, wb[idx], wb[idx + 1]))
        idx += 2
        z = mu + sigma * eps_ref[...]

        # Decoder: Linear + ReLU stack, last layer without activation.
        h = z.astype(compute_dtype)
        y = None
        for li in range(n_dec):
            y = linear(h, wb[idx], wb[idx + 1])
            idx += 2
            if li < n_dec - 1:
                h = jnp.maximum(y, 0.0).astype(compute_dtype)

        o_ref[...] = y.astype(o_ref.dtype)

    return kernel


# ---------------------------------------------------------------------------
# Wrapper
# ---------------------------------------------------------------------------
def _round_up(n, m):
    return ((n + m - 1) // m) * m


def _pad2(a, rows, cols):
    r, c = a.shape
    if r == rows and c == cols:
        return a
    return jnp.pad(a, ((0, rows - r), (0, cols - c)))


def vae_branch_forward(
    x,
    eps,
    branch,
    *,
    batch_tile=128,
    lane=128,               # use 256 on v7x to fill the 2x256 MXU
    compute_dtype=jnp.bfloat16,
    vmem_limit_bytes=None,  # set explicitly when embed sizes get large (v7x: 64 MiB VMEM)
    interpret=False,
):
    """Pallas forward of one VAE branch: decoder(reparam(encoder(x)))."""
    B, _ = x.shape
    z_dim = branch["mu"][0].shape[1]
    out_dim = branch["dec"][-1][0].shape[1]
    assert eps.shape == (B, z_dim)

    # Batch tiling: sublane-aligned tile, pad batch up to a multiple of the tile.
    TB = min(batch_tile, _round_up(B, 8))
    Bp = _round_up(B, TB)

    def padf(n):  # lane padding
        return _round_up(n, lane)

    # Zero-padding is exact: padded weight rows/cols and bias lanes are 0, padded
    # eps lanes are 0, so padded lanes carry 0 through ReLU / mu / sigma*eps and
    # never contaminate real lanes; we slice them off at the end.
    x_p = _pad2(x, Bp, padf(x.shape[1])).astype(compute_dtype)
    eps_p = _pad2(eps, Bp, padf(z_dim)).astype(jnp.float32)

    def pad_wb(w, b):
        ki, ko = w.shape
        return (
            _pad2(w, padf(ki), padf(ko)).astype(compute_dtype),  # halves weight DMA bytes
            _pad2(b, 1, padf(ko)).astype(jnp.float32),
        )

    enc = [pad_wb(*p) for p in branch["enc"]]
    mu = pad_wb(*branch["mu"])
    sg = pad_wb(*branch["sigma"])
    dec = [pad_wb(*p) for p in branch["dec"]]

    flat = []
    for w, b in enc + [mu, sg] + dec:
        flat += [w, b]

    n_enc, n_dec = len(enc), len(dec)
    kernel = make_vae_branch_kernel(n_enc, n_dec, compute_dtype)
    out_pad = padf(out_dim)

    def row_block(feat):
        # Batch-blocked, lane-dense (full padded feature width).
        return pl.BlockSpec((TB, feat), lambda i: (i, 0))

    def resident(shape):
        # Constant index_map -> weights/biases stay resident in VMEM across grid steps.
        return pl.BlockSpec(shape, lambda i: (0, 0))

    in_specs = [row_block(x_p.shape[1]), row_block(eps_p.shape[1])]
    in_specs += [resident(t.shape) for t in flat]

    compiler_kwargs = dict(dimension_semantics=("parallel",))
    if vmem_limit_bytes is not None:
        compiler_kwargs["vmem_limit_bytes"] = vmem_limit_bytes

    out = pl.pallas_call(
        kernel,
        out_shape=jax.ShapeDtypeStruct((Bp, out_pad), jnp.float32),
        grid=(Bp // TB,),
        in_specs=in_specs,
        out_specs=row_block(out_pad),
        compiler_params=pltpu.CompilerParams(**compiler_kwargs),
        interpret=interpret,
    )(x_p, eps_p, *flat)

    return out[:B, :out_dim]


def vae_forward(x, eps, params, feature_type, **kwargs):
    """VariationalAutoencoder.forward(x, feature_type) with explicit noise eps."""
    return vae_branch_forward(x, eps, params[feature_type], **kwargs)


# ---------------------------------------------------------------------------
# Parameters (deterministic synthetic init, PyTorch shapes stored transposed)
# ---------------------------------------------------------------------------
def _dense_params(key, fan_in, fan_out, scale=0.1):
    kw, kb = jax.random.split(key)
    w = scale * jax.random.normal(kw, (fan_in, fan_out), jnp.float32)
    b = scale * jax.random.normal(kb, (1, fan_out), jnp.float32)
    return w, b


def _branch_params(key, enc_dims, z_dim, dec_dims):
    assert dec_dims[0] == z_dim
    n_enc = len(enc_dims) - 1
    n_dec = len(dec_dims) - 1
    keys = jax.random.split(key, n_enc + 2 + n_dec)
    enc = [_dense_params(keys[i], enc_dims[i], enc_dims[i + 1]) for i in range(n_enc)]
    mu = _dense_params(keys[n_enc], enc_dims[-1], z_dim)
    sg = _dense_params(keys[n_enc + 1], enc_dims[-1], z_dim)
    dec = [
        _dense_params(keys[n_enc + 2 + i], dec_dims[i], dec_dims[i + 1])
        for i in range(n_dec)
    ]
    return {"enc": enc, "mu": mu, "sigma": sg, "dec": dec}


def init_vae_params(key, latent_struct, latent_anom, latent_prop,
                    struct_size, anom_size, prop_size):
    Ls, La, Lp = latent_struct, latent_anom, latent_prop
    Es, Ea, Ep = struct_size, anom_size, prop_size
    # Decoder_Struct chains Linear(L,2L) into Linear(E/2,E): the PyTorch model
    # itself only works when 2*L == E/2, i.e. struct_size == 4*latent_struct_dims.
    assert 2 * Ls == Es // 2, "Decoder_Struct requires struct_size == 4 * latent_struct_dims"
    ks, ka, kp = jax.random.split(key, 3)
    return {
        "struct": _branch_params(
            ks, enc_dims=[Es, Es // 2, Ls, Ls // 2, Ls // 4], z_dim=Ls // 4,
            dec_dims=[Ls // 4, Ls // 2, Ls, 2 * Ls, Es, Es]),
        "anomalous": _branch_params(
            ka, enc_dims=[Ea, Ea // 2, Ea // 2], z_dim=La,
            dec_dims=[La, Ea // 2, Ea, Ea]),
        "property": _branch_params(
            kp, enc_dims=[Ep, Ep // 2, Lp // 2, Lp // 4], z_dim=Lp // 4,
            dec_dims=[Lp // 4, Lp // 2, Lp, Ep, Ep]),
    }


# ---------------------------------------------------------------------------
# Pure-JAX reference (same bf16-matmul / f32-accumulate recipe)
# ---------------------------------------------------------------------------
def vae_branch_ref(x, eps, branch, compute_dtype=jnp.bfloat16):
    def lin(h, w, b):
        return (
            jnp.dot(h.astype(compute_dtype), w.astype(compute_dtype),
                    preferred_element_type=jnp.float32)
            + b.astype(jnp.float32)
        )

    h = x
    for w, b in branch["enc"]:
        h = jax.nn.relu(lin(h, w, b))
    mu = lin(h, *branch["mu"])
    sigma = jnp.exp(lin(h, *branch["sigma"]))
    h = mu + sigma * eps
    dec = branch["dec"]
    for li, (w, b) in enumerate(dec):
        y = lin(h, w, b)
        h = jax.nn.relu(y) if li < len(dec) - 1 else y
    return h


# ---------------------------------------------------------------------------
if __name__ == "__main__":
    latent_struct, latent_anom, latent_prop = 16, 32, 32
    struct_size, anom_size, prop_size = 64, 64, 64
    batch = 8

    key = jax.random.PRNGKey(0)
    kparams, kx, keps = jax.random.split(key, 3)
    params = init_vae_params(kparams, latent_struct, latent_anom, latent_prop,
                             struct_size, anom_size, prop_size)

    for idx, name in enumerate(["struct", "anomalous", "property"]):
        branch = params[name]
        in_dim = branch["enc"][0][0].shape[0]
        z_dim = branch["mu"][0].shape[1]
        x = jax.random.normal(jax.random.fold_in(kx, idx), (batch, in_dim), jnp.float32)
        eps = jax.random.normal(jax.random.fold_in(keps, idx), (batch, z_dim), jnp.float32)

        out = vae_forward(x, eps, params, name)
        out = jax.block_until_ready(out)

        ref = vae_branch_ref(x, eps, branch)
        assert out.shape == ref.shape, (name, out.shape, ref.shape)
        assert jnp.allclose(out, ref, atol=2e-2, rtol=2e-2), (
            name, float(jnp.max(jnp.abs(out - ref))))

    print("KERNEL_OK")
</pallas_src>

<mosaic_0001>
module attributes {stable_mosaic.version = 11 : i64} {
  func.func @kernel(%arg0: i32, %arg1: memref<8x128xbf16, #tpu.memory_space<vmem>>, %arg2: memref<8x128xf32, #tpu.memory_space<vmem>>, %arg3: memref<128x128xbf16, #tpu.memory_space<vmem>>, %arg4: memref<1x128xf32, #tpu.memory_space<vmem>>, %arg5: memref<128x128xbf16, #tpu.memory_space<vmem>>, %arg6: memref<1x128xf32, #tpu.memory_space<vmem>>, %arg7: memref<128x128xbf16, #tpu.memory_space<vmem>>, %arg8: memref<1x128xf32, #tpu.memory_space<vmem>>, %arg9: memref<128x128xbf16, #tpu.memory_space<vmem>>, %arg10: memref<1x128xf32, #tpu.memory_space<vmem>>, %arg11: memref<128x128xbf16, #tpu.memory_space<vmem>>, %arg12: memref<1x128xf32, #tpu.memory_space<vmem>>, %arg13: memref<128x128xbf16, #tpu.memory_space<vmem>>, %arg14: memref<1x128xf32, #tpu.memory_space<vmem>>, %arg15: memref<128x128xbf16, #tpu.memory_space<vmem>>, %arg16: memref<1x128xf32, #tpu.memory_space<vmem>>, %arg17: memref<128x128xbf16, #tpu.memory_space<vmem>>, %arg18: memref<1x128xf32, #tpu.memory_space<vmem>>, %arg19: memref<128x128xbf16, #tpu.memory_space<vmem>>, %arg20: memref<1x128xf32, #tpu.memory_space<vmem>>, %arg21: memref<128x128xbf16, #tpu.memory_space<vmem>>, %arg22: memref<1x128xf32, #tpu.memory_space<vmem>>, %arg23: memref<128x128xbf16, #tpu.memory_space<vmem>>, %arg24: memref<1x128xf32, #tpu.memory_space<vmem>>, %arg25: memref<8x128xf32, #tpu.memory_space<vmem>>) attributes {dimension_semantics = [#tpu.dimension_semantics<parallel>], iteration_bounds = array<i64: 1>, scalar_prefetch = 0 : i64, scratch_operands = 0 : i64, tpu.core_type = #tpu.core_type<tc>, window_params = [{transform_indices = @transform_0, window_bounds = array<i64: 8, 128>}, {transform_indices = @transform_1, window_bounds = array<i64: 8, 128>}, {pipeline_mode = #tpu.pipeline_mode<synchronous>, transform_indices = @transform_2, window_bounds = array<i64: 128, 128>}, {pipeline_mode = #tpu.pipeline_mode<synchronous>, transform_indices = @transform_3, window_bounds = array<i64: 1, 128>}, {pipeline_mode = #tpu.pipeline_mode<synchronous>, transform_indices = @transform_4, window_bounds = array<i64: 128, 128>}, {pipeline_mode = #tpu.pipeline_mode<synchronous>, transform_indices = @transform_5, window_bounds = array<i64: 1, 128>}, {pipeline_mode = #tpu.pipeline_mode<synchronous>, transform_indices = @transform_6, window_bounds = array<i64: 128, 128>}, {pipeline_mode = #tpu.pipeline_mode<synchronous>, transform_indices = @transform_7, window_bounds = array<i64: 1, 128>}, {pipeline_mode = #tpu.pipeline_mode<synchronous>, transform_indices = @transform_8, window_bounds = array<i64: 128, 128>}, {pipeline_mode = #tpu.pipeline_mode<synchronous>, transform_indices = @transform_9, window_bounds = array<i64: 1, 128>}, {pipeline_mode = #tpu.pipeline_mode<synchronous>, transform_indices = @transform_10, window_bounds = array<i64: 128, 128>}, {pipeline_mode = #tpu.pipeline_mode<synchronous>, transform_indices = @transform_11, window_bounds = array<i64: 1, 128>}, {pipeline_mode = #tpu.pipeline_mode<synchronous>, transform_indices = @transform_12, window_bounds = array<i64: 128, 128>}, {pipeline_mode = #tpu.pipeline_mode<synchronous>, transform_indices = @transform_13, window_bounds = array<i64: 1, 128>}, {pipeline_mode = #tpu.pipeline_mode<synchronous>, transform_indices = @transform_14, window_bounds = array<i64: 128, 128>}, {pipeline_mode = #tpu.pipeline_mode<synchronous>, transform_indices = @transform_15, window_bounds = array<i64: 1, 128>}, {pipeline_mode = #tpu.pipeline_mode<synchronous>, transform_indices = @transform_16, window_bounds = array<i64: 128, 128>}, {pipeline_mode = #tpu.pipeline_mode<synchronous>, transform_indices = @transform_17, window_bounds = array<i64: 1, 128>}, {pipeline_mode = #tpu.pipeline_mode<synchronous>, transform_indices = @transform_18, window_bounds = array<i64: 128, 128>}, {pipeline_mode = #tpu.pipeline_mode<synchronous>, transform_indices = @transform_19, window_bounds = array<i64: 1, 128>}, {pipeline_mode = #tpu.pipeline_mode<synchronous>, transform_indices = @transform_20, window_bounds = array<i64: 128, 128>}, {pipeline_mode = #tpu.pipeline_mode<synchronous>, transform_indices = @transform_21, window_bounds = array<i64: 1, 128>}, {pipeline_mode = #tpu.pipeline_mode<synchronous>, transform_indices = @transform_22, window_bounds = array<i64: 128, 128>}, {pipeline_mode = #tpu.pipeline_mode<synchronous>, transform_indices = @transform_23, window_bounds = array<i64: 1, 128>}, {transform_indices = @transform_24, window_bounds = array<i64: 8, 128>}]} {
    %c0 = arith.constant 0 : index
    %c0_0 = arith.constant 0 : index
    %0 = vector.load %arg1[%c0, %c0_0] : memref<8x128xbf16, #tpu.memory_space<vmem>>, vector<8x128xbf16>
    %c0_1 = arith.constant 0 : index
    %c0_2 = arith.constant 0 : index
    %1 = vector.load %arg3[%c0_1, %c0_2] : memref<128x128xbf16, #tpu.memory_space<vmem>>, vector<128x128xbf16>
    %cst = arith.constant dense<0.000000e+00> : vector<8x128xf32>
    %2 = tpu.matmul %0, %1, %cst {dimension_numbers = #tpu.dot_dimension_numbers<[1], [0], [0], [1], [0, 0, 1, 1], [], []>} : vector<8x128xbf16>, vector<128x128xbf16>, vector<8x128xf32> -> vector<8x128xf32>
    %c0_3 = arith.constant 0 : index
    %c0_4 = arith.constant 0 : index
    %3 = vector.load %arg4[%c0_3, %c0_4] : memref<1x128xf32, #tpu.memory_space<vmem>>, vector<1x128xf32>
    %4 = vector.broadcast %3 : vector<1x128xf32> to vector<8x128xf32>
    %5 = arith.addf %2, %4 : vector<8x128xf32>
    %cst_5 = arith.constant 0.000000e+00 : f32
    %6 = vector.broadcast %cst_5 : f32 to vector<8x128xf32>
    %7 = arith.maximumf %5, %6 : vector<8x128xf32>
    %8 = arith.truncf %7 : vector<8x128xf32> to vector<8x128xbf16>
    %c0_6 = arith.constant 0 : index
    %c0_7 = arith.constant 0 : index
    %9 = vector.load %arg5[%c0_6, %c0_7] : memref<128x128xbf16, #tpu.memory_space<vmem>>, vector<128x128xbf16>
    %cst_8 = arith.constant dense<0.000000e+00> : vector<8x128xf32>
    %10 = tpu.matmul %8, %9, %cst_8 {dimension_numbers = #tpu.dot_dimension_numbers<[1], [0], [0], [1], [0, 0, 1, 1], [], []>} : vector<8x128xbf16>, vector<128x128xbf16>, vector<8x128xf32> -> vector<8x128xf32>
    %c0_9 = arith.constant 0 : index
    %c0_10 = arith.constant 0 : index
    %11 = vector.load %arg6[%c0_9, %c0_10] : memref<1x128xf32, #tpu.memory_space<vmem>>, vector<1x128xf32>
    %12 = vector.broadcast %11 : vector<1x128xf32> to vector<8x128xf32>
    %13 = arith.addf %10, %12 : vector<8x128xf32>
    %cst_11 = arith.constant 0.000000e+00 : f32
    %14 = vector.broadcast %cst_11 : f32 to vector<8x128xf32>
    %15 = arith.maximumf %13, %14 : vector<8x128xf32>
    %16 = arith.truncf %15 : vector<8x128xf32> to vector<8x128xbf16>
    %c0_12 = arith.constant 0 : index
    %c0_13 = arith.constant 0 : index
    %17 = vector.load %arg7[%c0_12, %c0_13] : memref<128x128xbf16, #tpu.memory_space<vmem>>, vector<128x128xbf16>
    %cst_14 = arith.constant dense<0.000000e+00> : vector<8x128xf32>
    %18 = tpu.matmul %16, %17, %cst_14 {dimension_numbers = #tpu.dot_dimension_numbers<[1], [0], [0], [1], [0, 0, 1, 1], [], []>} : vector<8x128xbf16>, vector<128x128xbf16>, vector<8x128xf32> -> vector<8x128xf32>
    %c0_15 = arith.constant 0 : index
    %c0_16 = arith.constant 0 : index
    %19 = vector.load %arg8[%c0_15, %c0_16] : memref<1x128xf32, #tpu.memory_space<vmem>>, vector<1x128xf32>
    %20 = vector.broadcast %19 : vector<1x128xf32> to vector<8x128xf32>
    %21 = arith.addf %18, %20 : vector<8x128xf32>
    %cst_17 = arith.constant 0.000000e+00 : f32
    %22 = vector.broadcast %cst_17 : f32 to vector<8x128xf32>
    %23 = arith.maximumf %21, %22 : vector<8x128xf32>
    %24 = arith.truncf %23 : vector<8x128xf32> to vector<8x128xbf16>
    %c0_18 = arith.constant 0 : index
    %c0_19 = arith.constant 0 : index
    %25 = vector.load %arg9[%c0_18, %c0_19] : memref<128x128xbf16, #tpu.memory_space<vmem>>, vector<128x128xbf16>
    %cst_20 = arith.constant dense<0.000000e+00> : vector<8x128xf32>
    %26 = tpu.matmul %24, %25, %cst_20 {dimension_numbers = #tpu.dot_dimension_numbers<[1], [0], [0], [1], [0, 0, 1, 1], [], []>} : vector<8x128xbf16>, vector<128x128xbf16>, vector<8x128xf32> -> vector<8x128xf32>
    %c0_21 = arith.constant 0 : index
    %c0_22 = arith.constant 0 : index
    %27 = vector.load %arg10[%c0_21, %c0_22] : memref<1x128xf32, #tpu.memory_space<vmem>>, vector<1x128xf32>
    %28 = vector.broadcast %27 : vector<1x128xf32> to vector<8x128xf32>
    %29 = arith.addf %26, %28 : vector<8x128xf32>
    %cst_23 = arith.constant 0.000000e+00 : f32
    %30 = vector.broadcast %cst_23 : f32 to vector<8x128xf32>
    %31 = arith.maximumf %29, %30 : vector<8x128xf32>
    %32 = arith.truncf %31 : vector<8x128xf32> to vector<8x128xbf16>
    %c0_24 = arith.constant 0 : index
    %c0_25 = arith.constant 0 : index
    %33 = vector.load %arg11[%c0_24, %c0_25] : memref<128x128xbf16, #tpu.memory_space<vmem>>, vector<128x128xbf16>
    %cst_26 = arith.constant dense<0.000000e+00> : vector<8x128xf32>
    %34 = tpu.matmul %32, %33, %cst_26 {dimension_numbers = #tpu.dot_dimension_numbers<[1], [0], [0], [1], [0, 0, 1, 1], [], []>} : vector<8x128xbf16>, vector<128x128xbf16>, vector<8x128xf32> -> vector<8x128xf32>
    %c0_27 = arith.constant 0 : index
    %c0_28 = arith.constant 0 : index
    %35 = vector.load %arg12[%c0_27, %c0_28] : memref<1x128xf32, #tpu.memory_space<vmem>>, vector<1x128xf32>
    %36 = vector.broadcast %35 : vector<1x128xf32> to vector<8x128xf32>
    %37 = arith.addf %34, %36 : vector<8x128xf32>
    %c0_29 = arith.constant 0 : index
    %c0_30 = arith.constant 0 : index
    %38 = vector.load %arg13[%c0_29, %c0_30] : memref<128x128xbf16, #tpu.memory_space<vmem>>, vector<128x128xbf16>
    %cst_31 = arith.constant dense<0.000000e+00> : vector<8x128xf32>
    %39 = tpu.matmul %32, %38, %cst_31 {dimension_numbers = #tpu.dot_dimension_numbers<[1], [0], [0], [1], [0, 0, 1, 1], [], []>} : vector<8x128xbf16>, vector<128x128xbf16>, vector<8x128xf32> -> vector<8x128xf32>
    %c0_32 = arith.constant 0 : index
    %c0_33 = arith.constant 0 : index
    %40 = vector.load %arg14[%c0_32, %c0_33] : memref<1x128xf32, #tpu.memory_space<vmem>>, vector<1x128xf32>
    %41 = vector.broadcast %40 : vector<1x128xf32> to vector<8x128xf32>
    %42 = arith.addf %39, %41 : vector<8x128xf32>
    %43 = math.exp %42 : vector<8x128xf32>
    %c0_34 = arith.constant 0 : index
    %c0_35 = arith.constant 0 : index
    %44 = vector.load %arg2[%c0_34, %c0_35] : memref<8x128xf32, #tpu.memory_space<vmem>>, vector<8x128xf32>
    %45 = arith.mulf %43, %44 : vector<8x128xf32>
    %46 = arith.addf %37, %45 : vector<8x128xf32>
    %47 = arith.truncf %46 : vector<8x128xf32> to vector<8x128xbf16>
    %c0_36 = arith.constant 0 : index
    %c0_37 = arith.constant 0 : index
    %48 = vector.load %arg15[%c0_36, %c0_37] : memref<128x128xbf16, #tpu.memory_space<vmem>>, vector<128x128xbf16>
    %cst_38 = arith.constant dense<0.000000e+00> : vector<8x128xf32>
    %49 = tpu.matmul %47, %48, %cst_38 {dimension_numbers = #tpu.dot_dimension_numbers<[1], [0], [0], [1], [0, 0, 1, 1], [], []>} : vector<8x128xbf16>, vector<128x128xbf16>, vector<8x128xf32> -> vector<8x128xf32>
    %c0_39 = arith.constant 0 : index
    %c0_40 = arith.constant 0 : index
    %50 = vector.load %arg16[%c0_39, %c0_40] : memref<1x128xf32, #tpu.memory_space<vmem>>, vector<1x128xf32>
    %51 = vector.broadcast %50 : vector<1x128xf32> to vector<8x128xf32>
    %52 = arith.addf %49, %51 : vector<8x128xf32>
    %cst_41 = arith.constant 0.000000e+00 : f32
    %53 = vector.broadcast %cst_41 : f32 to vector<8x128xf32>
    %54 = arith.maximumf %52, %53 : vector<8x128xf32>
    %55 = arith.truncf %54 : vector<8x128xf32> to vector<8x128xbf16>
    %c0_42 = arith.constant 0 : index
    %c0_43 = arith.constant 0 : index
    %56 = vector.load %arg17[%c0_42, %c0_43] : memref<128x128xbf16, #tpu.memory_space<vmem>>, vector<128x128xbf16>
    %cst_44 = arith.constant dense<0.000000e+00> : vector<8x128xf32>
    %57 = tpu.matmul %55, %56, %cst_44 {dimension_numbers = #tpu.dot_dimension_numbers<[1], [0], [0], [1], [0, 0, 1, 1], [], []>} : vector<8x128xbf16>, vector<128x128xbf16>, vector<8x128xf32> -> vector<8x128xf32>
    %c0_45 = arith.constant 0 : index
    %c0_46 = arith.constant 0 : index
    %58 = vector.load %arg18[%c0_45, %c0_46] : memref<1x128xf32, #tpu.memory_space<vmem>>, vector<1x128xf32>
    %59 = vector.broadcast %58 : vector<1x128xf32> to vector<8x128xf32>
    %60 = arith.addf %57, %59 : vector<8x128xf32>
    %cst_47 = arith.constant 0.000000e+00 : f32
    %61 = vector.broadcast %cst_47 : f32 to vector<8x128xf32>
    %62 = arith.maximumf %60, %61 : vector<8x128xf32>
    %63 = arith.truncf %62 : vector<8x128xf32> to vector<8x128xbf16>
    %c0_48 = arith.constant 0 : index
    %c0_49 = arith.constant 0 : index
    %64 = vector.load %arg19[%c0_48, %c0_49] : memref<128x128xbf16, #tpu.memory_space<vmem>>, vector<128x128xbf16>
    %cst_50 = arith.constant dense<0.000000e+00> : vector<8x128xf32>
    %65 = tpu.matmul %63, %64, %cst_50 {dimension_numbers = #tpu.dot_dimension_numbers<[1], [0], [0], [1], [0, 0, 1, 1], [], []>} : vector<8x128xbf16>, vector<128x128xbf16>, vector<8x128xf32> -> vector<8x128xf32>
    %c0_51 = arith.constant 0 : index
    %c0_52 = arith.constant 0 : index
    %66 = vector.load %arg20[%c0_51, %c0_52] : memref<1x128xf32, #tpu.memory_space<vmem>>, vector<1x128xf32>
    %67 = vector.broadcast %66 : vector<1x128xf32> to vector<8x128xf32>
    %68 = arith.addf %65, %67 : vector<8x128xf32>
    %cst_53 = arith.constant 0.000000e+00 : f32
    %69 = vector.broadcast %cst_53 : f32 to vector<8x128xf32>
    %70 = arith.maximumf %68, %69 : vector<8x128xf32>
    %71 = arith.truncf %70 : vector<8x128xf32> to vector<8x128xbf16>
    %c0_54 = arith.constant 0 : index
    %c0_55 = arith.constant 0 : index
    %72 = vector.load %arg21[%c0_54, %c0_55] : memref<128x128xbf16, #tpu.memory_space<vmem>>, vector<128x128xbf16>
    %cst_56 = arith.constant dense<0.000000e+00> : vector<8x128xf32>
    %73 = tpu.matmul %71, %72, %cst_56 {dimension_numbers = #tpu.dot_dimension_numbers<[1], [0], [0], [1], [0, 0, 1, 1], [], []>} : vector<8x128xbf16>, vector<128x128xbf16>, vector<8x128xf32> -> vector<8x128xf32>
    %c0_57 = arith.constant 0 : index
    %c0_58 = arith.constant 0 : index
    %74 = vector.load %arg22[%c0_57, %c0_58] : memref<1x128xf32, #tpu.memory_space<vmem>>, vector<1x128xf32>
    %75 = vector.broadcast %74 : vector<1x128xf32> to vector<8x128xf32>
    %76 = arith.addf %73, %75 : vector<8x128xf32>
    %cst_59 = arith.constant 0.000000e+00 : f32
    %77 = vector.broadcast %cst_59 : f32 to vector<8x128xf32>
    %78 = arith.maximumf %76, %77 : vector<8x128xf32>
    %79 = arith.truncf %78 : vector<8x128xf32> to vector<8x128xbf16>
    %c0_60 = arith.constant 0 : index
    %c0_61 = arith.constant 0 : index
    %80 = vector.load %arg23[%c0_60, %c0_61] : memref<128x128xbf16, #tpu.memory_space<vmem>>, vector<128x128xbf16>
    %cst_62 = arith.constant dense<0.000000e+00> : vector<8x128xf32>
    %81 = tpu.matmul %79, %80, %cst_62 {dimension_numbers = #tpu.dot_dimension_numbers<[1], [0], [0], [1], [0, 0, 1, 1], [], []>} : vector<8x128xbf16>, vector<128x128xbf16>, vector<8x128xf32> -> vector<8x128xf32>
    %c0_63 = arith.constant 0 : index
    %c0_64 = arith.constant 0 : index
    %82 = vector.load %arg24[%c0_63, %c0_64] : memref<1x128xf32, #tpu.memory_space<vmem>>, vector<1x128xf32>
    %83 = vector.broadcast %82 : vector<1x128xf32> to vector<8x128xf32>
    %84 = arith.addf %81, %83 : vector<8x128xf32>
    %c0_65 = arith.constant 0 : index
    %c0_66 = arith.constant 0 : index
    %85 = vector.load %arg25[%c0_65, %c0_66] : memref<8x128xf32, #tpu.memory_space<vmem>>, vector<8x128xf32>
    tpu.vector_store %arg25[%c0_65, %c0_66], %84 {strides = array<i32>} : memref<8x128xf32, #tpu.memory_space<vmem>>, vector<8x128xf32>,
    return
  }
  func.func @transform_0(%arg0: i32) -> (i32, i32) {
    %c0_i32 = arith.constant 0 : i32
    %c0_i32_0 = arith.constant 0 : i32
    return %arg0, %c0_i32 : i32, i32
  }
  func.func @transform_1(%arg0: i32) -> (i32, i32) {
    %c0_i32 = arith.constant 0 : i32
    %c0_i32_0 = arith.constant 0 : i32
    return %arg0, %c0_i32 : i32, i32
  }
  func.func @transform_2(%arg0: i32) -> (i32, i32) {
    %c0_i32 = arith.constant 0 : i32
    %c0_i32_0 = arith.constant 0 : i32
    %c0_i32_1 = arith.constant 0 : i32
    return %c0_i32, %c0_i32_0 : i32, i32
  }
  func.func @transform_3(%arg0: i32) -> (i32, i32) {
    %c0_i32 = arith.constant 0 : i32
    %c0_i32_0 = arith.constant 0 : i32
    %c0_i32_1 = arith.constant 0 : i32
    return %c0_i32, %c0_i32_0 : i32, i32
  }
  func.func @transform_4(%arg0: i32) -> (i32, i32) {
    %c0_i32 = arith.constant 0 : i32
    %c0_i32_0 = arith.constant 0 : i32
    %c0_i32_1 = arith.constant 0 : i32
    return %c0_i32, %c0_i32_0 : i32, i32
  }
  func.func @transform_5(%arg0: i32) -> (i32, i32) {
    %c0_i32 = arith.constant 0 : i32
    %c0_i32_0 = arith.constant 0 : i32
    %c0_i32_1 = arith.constant 0 : i32
    return %c0_i32, %c0_i32_0 : i32, i32
  }
  func.func @transform_6(%arg0: i32) -> (i32, i32) {
    %c0_i32 = arith.constant 0 : i32
    %c0_i32_0 = arith.constant 0 : i32
    %c0_i32_1 = arith.constant 0 : i32
    return %c0_i32, %c0_i32_0 : i32, i32
  }
  func.func @transform_7(%arg0: i32) -> (i32, i32) {
    %c0_i32 = arith.constant 0 : i32
    %c0_i32_0 = arith.constant 0 : i32
    %c0_i32_1 = arith.constant 0 : i32
    return %c0_i32, %c0_i32_0 : i32, i32
  }
  func.func @transform_8(%arg0: i32) -> (i32, i32) {
    %c0_i32 = arith.constant 0 : i32
    %c0_i32_0 = arith.constant 0 : i32
    %c0_i32_1 = arith.constant 0 : i32
    return %c0_i32, %c0_i32_0 : i32, i32
  }
  func.func @transform_9(%arg0: i32) -> (i32, i32) {
    %c0_i32 = arith.constant 0 : i32
    %c0_i32_0 = arith.constant 0 : i32
    %c0_i32_1 = arith.constant 0 : i32
    return %c0_i32, %c0_i32_0 : i32, i32
  }
  func.func @transform_10(%arg0: i32) -> (i32, i32) {
    %c0_i32 = arith.constant 0 : i32
    %c0_i32_0 = arith.constant 0 : i32
    %c0_i32_1 = arith.constant 0 : i32
    return %c0_i32, %c0_i32_0 : i32, i32
  }
  func.func @transform_11(%arg0: i32) -> (i32, i32) {
    %c0_i32 = arith.constant 0 : i32
    %c0_i32_0 = arith.constant 0 : i32
    %c0_i32_1 = arith.constant 0 : i32
    return %c0_i32, %c0_i32_0 : i32, i32
  }
  func.func @transform_12(%arg0: i32) -> (i32, i32) {
    %c0_i32 = arith.constant 0 : i32
    %c0_i32_0 = arith.constant 0 : i32
    %c0_i32_1 = arith.constant 0 : i32
    return %c0_i32, %c0_i32_0 : i32, i32
  }
  func.func @transform_13(%arg0: i32) -> (i32, i32) {
    %c0_i32 = arith.constant 0 : i32
    %c0_i32_0 = arith.constant 0 : i32
    %c0_i32_1 = arith.constant 0 : i32
    return %c0_i32, %c0_i32_0 : i32, i32
  }
  func.func @transform_14(%arg0: i32) -> (i32, i32) {
    %c0_i32 = arith.constant 0 : i32
    %c0_i32_0 = arith.constant 0 : i32
    %c0_i32_1 = arith.constant 0 : i32
    return %c0_i32, %c0_i32_0 : i32, i32
  }
  func.func @transform_15(%arg0: i32) -> (i32, i32) {
    %c0_i32 = arith.constant 0 : i32
    %c0_i32_0 = arith.constant 0 : i32
    %c0_i32_1 = arith.constant 0 : i32
    return %c0_i32, %c0_i32_0 : i32, i32
  }
  func.func @transform_16(%arg0: i32) -> (i32, i32) {
    %c0_i32 = arith.constant 0 : i32
    %c0_i32_0 = arith.constant 0 : i32
    %c0_i32_1 = arith.constant 0 : i32
    return %c0_i32, %c0_i32_0 : i32, i32
  }
  func.func @transform_17(%arg0: i32) -> (i32, i32) {
    %c0_i32 = arith.constant 0 : i32
    %c0_i32_0 = arith.constant 0 : i32
    %c0_i32_1 = arith.constant 0 : i32
    return %c0_i32, %c0_i32_0 : i32, i32
  }
  func.func @transform_18(%arg0: i32) -> (i32, i32) {
    %c0_i32 = arith.constant 0 : i32
    %c0_i32_0 = arith.constant 0 : i32
    %c0_i32_1 = arith.constant 0 : i32
    return %c0_i32, %c0_i32_0 : i32, i32
  }
  func.func @transform_19(%arg0: i32) -> (i32, i32) {
    %c0_i32 = arith.constant 0 : i32
    %c0_i32_0 = arith.constant 0 : i32
    %c0_i32_1 = arith.constant 0 : i32
    return %c0_i32, %c0_i32_0 : i32, i32
  }
  func.func @transform_20(%arg0: i32) -> (i32, i32) {
    %c0_i32 = arith.constant 0 : i32
    %c0_i32_0 = arith.constant 0 : i32
    %c0_i32_1 = arith.constant 0 : i32
    return %c0_i32, %c0_i32_0 : i32, i32
  }
  func.func @transform_21(%arg0: i32) -> (i32, i32) {
    %c0_i32 = arith.constant 0 : i32
    %c0_i32_0 = arith.constant 0 : i32
    %c0_i32_1 = arith.constant 0 : i32
    return %c0_i32, %c0_i32_0 : i32, i32
  }
  func.func @transform_22(%arg0: i32) -> (i32, i32) {
    %c0_i32 = arith.constant 0 : i32
    %c0_i32_0 = arith.constant 0 : i32
    %c0_i32_1 = arith.constant 0 : i32
    return %c0_i32, %c0_i32_0 : i32, i32
  }
  func.func @transform_23(%arg0: i32) -> (i32, i32) {
    %c0_i32 = arith.constant 0 : i32
    %c0_i32_0 = arith.constant 0 : i32
    %c0_i32_1 = arith.constant 0 : i32
    return %c0_i32, %c0_i32_0 : i32, i32
  }
  func.func @transform_24(%arg0: i32) -> (i32, i32) {
    %c0_i32 = arith.constant 0 : i32
    %c0_i32_0 = arith.constant 0 : i32
    return %arg0, %c0_i32 : i32, i32
  }
}

</mosaic_0001>

<bundles_post_ra>
// kernel: tpu_custom_call.1
= control target key start
LH: loop header
LB: loop body
LE: loop exit
PB: predicated region body
PF: predicated region fallthrough
CT: control target
= control target key end

     0   :  { %s3010_s0 = inlined_call_operand.hbm [shape: bf16[8,128], index: 0, kind: input, shape index: {}]   ;;  %s3011_s1 = inlined_call_operand.hbm [shape: f32[8,128], index: 1, kind: input, shape index: {}]   ;;  %s3012_s2 = inlined_call_operand.hbm [shape: bf16[128,128], index: 2, kind: input, shape index: {}]   ;;  %s3013_s3 = inlined_call_operand.vmem [shape: f32[1,128], index: 3, kind: input, shape index: {}]   ;;  %s3014_s4 = inlined_call_operand.hbm [shape: bf16[128,128], index: 4, kind: input, shape index: {}]   ;;  %s3015_s5 = inlined_call_operand.vmem [shape: f32[1,128], index: 5, kind: input, shape index: {}]   ;;  %s3016_s6 = inlined_call_operand.hbm [shape: bf16[128,128], index: 6, kind: input, shape index: {}]   ;;  %s3017_s7 = inlined_call_operand.vmem [shape: f32[1,128], index: 7, kind: input, shape index: {}]   ;;  %s3018_s8 = inlined_call_operand.hbm [shape: bf16[128,128], index: 8, kind: input, shape index: {}]   ;;  %s3019_s9 = inlined_call_operand.vmem [shape: f32[1,128], index: 9, kind: input, shape index: {}]   ;;  %s3020_s10 = inlined_call_operand.hbm [shape: bf16[128,128], index: 10, kind: input, shape index: {}]   ;;  %s3021_s11 = inlined_call_operand.hbm [shape: f32[1,128], index: 11, kind: input, shape index: {}]   ;;  %s3022_s12 = inlined_call_operand.hbm [shape: bf16[128,128], index: 12, kind: input, shape index: {}]   ;;  %s3023_s13 = inlined_call_operand.hbm [shape: f32[1,128], index: 13, kind: input, shape index: {}]   ;;  %s3024_s14 = inlined_call_operand.hbm [shape: bf16[128,128], index: 14, kind: input, shape index: {}]   ;;  %s3025_s15 = inlined_call_operand.hbm [shape: f32[1,128], index: 15, kind: input, shape index: {}]   ;;  %s3026_s16 = inlined_call_operand.hbm [shape: bf16[128,128], index: 16, kind: input, shape index: {}]   ;;  %s3027_s17 = inlined_call_operand.hbm [shape: f32[1,128], index: 17, kind: input, shape index: {}]   ;;  %s3028_s18 = inlined_call_operand.vmem [shape: bf16[128,128], index: 18, kind: input, shape index: {}]   ;;  %s3029_s19 = inlined_call_operand.vmem [shape: f32[1,128], index: 19, kind: input, shape index: {}]   ;;  %s3030_s20 = inlined_call_operand.hbm [shape: bf16[128,128], index: 20, kind: input, shape index: {}]   ;;  %s3031_s21 = inlined_call_operand.vmem [shape: f32[1,128], index: 21, kind: input, shape index: {}]   ;;  %s3032_s22 = inlined_call_operand.hbm [shape: bf16[128,128], index: 22, kind: input, shape index: {}]   ;;  %s3033_s23 = inlined_call_operand.vmem [shape: f32[1,128], index: 23, kind: input, shape index: {}]   ;;  %s3034_s24 = inlined_call_operand.hbm [shape: f32[8,128], index: 24, kind: output, shape index: {}]  }
   0x1   :  { %3042 = sst [smem:[#allocation39_spill]] %s3010_s0 }
   0x2   :  { %3043 = sst [smem:[#allocation40_spill]] %s3011_s1 }
   0x3   :  { %3044 = sst [smem:[#allocation41_spill]] %s3012_s2 }
   0x4   :  { %3045 = sst [smem:[#allocation42_spill]] %s3013_s3 }
   0x5   :  { %3046 = sst [smem:[#allocation43_spill]] %s3014_s4 }
   0x6   :  { %3047 = sst [smem:[#allocation44_spill]] %s3015_s5 }
   0x7   :  { %3048 = sst [smem:[#allocation45_spill]] %s3016_s6 }
   0x8   :  { %3049 = sst [smem:[#allocation46_spill]] %s3017_s7 }
   0x9   :  { %3050 = sst [smem:[#allocation47_spill]] %s3018_s8 }
   0xa   :  { %3051 = sst [smem:[#allocation48_spill]] %s3033_s23 }
   0xb   :  { %3052 = sst [smem:[#allocation49_spill]] %s3034_s24 }
   0xc   :  { %29 = vsyncpa [#allocation3], 0 }
   0xd   :  { %30 = vsyncpa [#allocation6], 0 }
   0xe   :  { %31 = vsyncpa [#allocation9], 0 }
   0xf   :  { %32 = vsyncpa [#allocation12], 0 }
  0x10   :  { %33 = vsyncpa [#allocation15], 0 }
  0x11   :  { %34 = vsyncpa [#allocation18], 0 }
  0x12   :  { %35 = vsyncpa [#allocation21], 0 }
  0x13   :  { %36 = vsyncpa [#allocation24], 0 }
  0x14   :  { %37 = vsyncpa [#allocation27], 0 }
  0x15   :  { %38 = vsyncpa [#allocation4], 0  ;;  %s2475_s5 = smov [#allocation5]   ;;  %s3053_s6 = sld [smem:[#allocation40_spill]] }
  0x16   :  { %s55_s26 = sshll.u32 %s2475_s5, 4  ;;  %s56_s26 = int_to_ptr.vmem [resolvable:$true] %s55_s26 }
  0x1b   :  { %s2081_s2 = scalar_lea.hbm %s3053_s6, 128 }
  0x1c   :  { %p2082_p0 = scmp.ne.s32.totalorder %s3053_s6, %s2081_s2  ;;  %p2085_p1 = scmp.lt.u32.totalorder %s2081_s2, %s3053_s6 }
  0x1e   :  { %p2087_p2 = pnand %p2085_p1, %p2082_p0 }
  0x20   :  { %2090 = shalt.err (!%p2087_p2)
}
  0x21   :  { %s2091_s3 = scalar_lea.vmem %s56_s26, 128  ;;  %p2096_p4 = scmp.lt.s32.totalorder %s56_s26, %s56_s26 }
  0x22   :  { %p2092_p3 = scmp.ne.s32.totalorder %s56_s26, %s2091_s3  ;;  %p2097_p5 = scmp.lt.s32.totalorder %s2091_s3, %s2091_s3 }
  0x24   :  { %p2098_p6 = por %p2097_p5, %p2096_p4 }
  0x26   :  { %p2099_p7 = pnand %p2098_p6, %p2092_p3 }
  0x28   :  { %2102 = shalt.err (!%p2099_p7)
}
  0x29   :  { %58 = dma.hbm_to_vmem [thread:$0]  %s3053_s6, 128, %s56_s26, [#allocation6]  }
  0x2a   :  { %s2476_s4 = smov [#allocation8]   ;;  %s2477_s5 = smov [#allocation11]  }
  0x2b   :  { %s78_s1 = sshll.u32 %s2476_s4, 4  ;;  %s106_s27 = sshll.u32 %s2477_s5, 4  ;;  %s79_s1 = int_to_ptr.vmem [resolvable:$true] %s78_s1  ;;  %s107_s27 = int_to_ptr.vmem [resolvable:$true] %s106_s27 }
  0x2c   :  { %s3054_s29 = sld [smem:[#allocation43_spill]] }
  0x32   :  { %s2103_s0 = scalar_lea.hbm %s3054_s29, 1024 }
  0x33   :  { %p2104_p8 = scmp.ne.s32.totalorder %s3054_s29, %s2103_s0  ;;  %p2107_p9 = scmp.lt.u32.totalorder %s2103_s0, %s3054_s29 }
  0x35   :  { %p2109_p10 = pnand %p2107_p9, %p2104_p8 }
  0x37   :  { %2112 = shalt.err (!%p2109_p10)
}
  0x38   :  { %s2113_s26 = scalar_lea.vmem %s79_s1, 1024  ;;  %p2118_p12 = scmp.lt.s32.totalorder %s79_s1, %s79_s1 }
  0x39   :  { %p2114_p11 = scmp.ne.s32.totalorder %s79_s1, %s2113_s26  ;;  %p2119_p13 = scmp.lt.s32.totalorder %s2113_s26, %s2113_s26 }
  0x3b   :  { %p2120_p0 = por %p2119_p13, %p2118_p12 }
  0x3d   :  { %p2121_p1 = pnand %p2120_p0, %p2114_p11 }
  0x3f   :  { %2124 = shalt.err (!%p2121_p1)
}
  0x40   :  { %s2478_s6 = smov 64   ;;  %s2479_s25 = smov 4  }
  0x41   :  { %84 = dma.hbm_to_vmem [thread:$0]  %s3054_s29, 1024, %s79_s1, [#allocation9], %s2478_s6, %s2478_s6, %s2479_s25  }
  0x42   :  { %s3055_s28 = sld [smem:[#allocation47_spill]] }
  0x48   :  { %s2125_s2 = scalar_lea.hbm %s3055_s28, 1024 }
  0x49   :  { %p2126_p2 = scmp.ne.s32.totalorder %s3055_s28, %s2125_s2  ;;  %p2129_p3 = scmp.lt.u32.totalorder %s2125_s2, %s3055_s28 }
  0x4b   :  { %p2131_p4 = pnand %p2129_p3, %p2126_p2 }
  0x4d   :  { %2134 = shalt.err (!%p2131_p4)
}
  0x4e   :  { %s2135_s26 = scalar_lea.vmem %s107_s27, 1024  ;;  %p2140_p6 = scmp.lt.s32.totalorder %s107_s27, %s107_s27 }
  0x4f   :  { %p2136_p5 = scmp.ne.s32.totalorder %s107_s27, %s2135_s26  ;;  %p2141_p7 = scmp.lt.s32.totalorder %s2135_s26, %s2135_s26 }
  0x51   :  { %p2142_p8 = por %p2141_p7, %p2140_p6 }
  0x53   :  { %p2143_p9 = pnand %p2142_p8, %p2136_p5 }
  0x55   :  { %2146 = shalt.err (!%p2143_p9)
}
  0x56   :  { %112 = dma.hbm_to_vmem [thread:$0]  %s3055_s28, 1024, %s107_s27, [#allocation12], %s2478_s6, %s2478_s6, %s2479_s25  }
  0x57   :  { %s2480_s8 = smov [#allocation14]   ;;  %s2481_s24 = smov [#allocation17]  }
  0x58   :  { %s133_s4 = sshll.u32 %s2480_s8, 4  ;;  %s155_s5 = sshll.u32 %s2481_s24, 4  ;;  %s134_s4 = int_to_ptr.vmem [resolvable:$true] %s133_s4  ;;  %s156_s5 = int_to_ptr.vmem [resolvable:$true] %s155_s5 }
  0x59   :  { %s2147_s7 = scalar_lea.hbm %s3021_s11, 16 }
  0x5a   :  { %p2148_p10 = scmp.ne.s32.totalorder %s3021_s11, %s2147_s7  ;;  %p2151_p11 = scmp.lt.u32.totalorder %s2147_s7, %s3021_s11 }
  0x5c   :  { %p2153_p12 = pnand %p2151_p11, %p2148_p10 }
  0x5e   :  { %2156 = shalt.err (!%p2153_p12)
}
  0x5f   :  { %s2157_s27 = scalar_lea.vmem %s134_s4, 16  ;;  %s2161_s28 = scalar_lea.vmem %s134_s4, 32 }
  0x60   :  { %p2158_p13 = scmp.ne.s32.totalorder %s134_s4, %s2157_s27  ;;  %p2162_p0 = scmp.lt.s32.totalorder %s134_s4, %s134_s4 }
  0x61   :  { %p2163_p1 = scmp.lt.s32.totalorder %s2161_s28, %s2157_s27 }
  0x63   :  { %p2164_p2 = por %p2163_p1, %p2162_p0 }
  0x65   :  { %p2165_p3 = pnand %p2164_p2, %p2158_p13 }
  0x67   :  { %2168 = shalt.err (!%p2165_p3)
}
  0x68   :  { %136 = dma.hbm_to_vmem [thread:$0]  %s3021_s11, 16, %s134_s4, [#allocation15]  }
  0x69   :  { %s2169_s23 = scalar_lea.hbm %s3023_s13, 16 }
  0x6a   :  { %p2170_p4 = scmp.ne.s32.totalorder %s3023_s13, %s2169_s23  ;;  %p2173_p5 = scmp.lt.u32.totalorder %s2169_s23, %s3023_s13 }
  0x6c   :  { %p2175_p6 = pnand %p2173_p5, %p2170_p4 }
  0x6e   :  { %2178 = shalt.err (!%p2175_p6)
}
  0x6f   :  { %s2179_s3 = scalar_lea.vmem %s156_s5, 16  ;;  %s2183_s26 = scalar_lea.vmem %s156_s5, 32 }
  0x70   :  { %p2180_p7 = scmp.ne.s32.totalorder %s156_s5, %s2179_s3  ;;  %p2184_p8 = scmp.lt.s32.totalorder %s156_s5, %s156_s5 }
  0x71   :  { %p2185_p9 = scmp.lt.s32.totalorder %s2183_s26, %s2179_s3 }
  0x73   :  { %p2186_p10 = por %p2185_p9, %p2184_p8 }
  0x75   :  { %p2187_p11 = pnand %p2186_p10, %p2180_p7 }
  0x77   :  { %2190 = shalt.err (!%p2187_p11)
}
  0x78   :  { %158 = dma.hbm_to_vmem [thread:$0]  %s3023_s13, 16, %s156_s5, [#allocation18]  }
  0x79   :  { %s2482_s27 = smov [#allocation20]   ;;  %s2483_s1 = smov [#allocation23]  }
  0x7a   :  { %s177_s28 = sshll.u32 %s2482_s27, 4  ;;  %s199_s29 = sshll.u32 %s2483_s1, 4  ;;  %s178_s28 = int_to_ptr.vmem [resolvable:$true] %s177_s28  ;;  %s200_s29 = int_to_ptr.vmem [resolvable:$true] %s199_s29 }
  0x7b   :  { %s2191_s23 = scalar_lea.hbm %s3025_s15, 16 }
  0x7c   :  { %p2192_p12 = scmp.ne.s32.totalorder %s3025_s15, %s2191_s23  ;;  %p2195_p13 = scmp.lt.u32.totalorder %s2191_s23, %s3025_s15 }
  0x7e   :  { %p2197_p0 = pnand %p2195_p13, %p2192_p12 }
  0x80   :  { %2200 = shalt.err (!%p2197_p0)
}
  0x81   :  { %s2201_s13 = scalar_lea.vmem %s178_s28, 16  ;;  %s2205_s5 = scalar_lea.vmem %s178_s28, 32 }
  0x82   :  { %p2202_p1 = scmp.ne.s32.totalorder %s178_s28, %s2201_s13  ;;  %p2206_p2 = scmp.lt.s32.totalorder %s178_s28, %s178_s28 }
  0x83   :  { %p2207_p3 = scmp.lt.s32.totalorder %s2205_s5, %s2201_s13 }
  0x85   :  { %p2208_p4 = por %p2207_p3, %p2206_p2 }
  0x87   :  { %p2209_p5 = pnand %p2208_p4, %p2202_p1 }
  0x89   :  { %2212 = shalt.err (!%p2209_p5)
}
  0x8a   :  { %180 = dma.hbm_to_vmem [thread:$0]  %s3025_s15, 16, %s178_s28, [#allocation21]  }
  0x8b   :  { %s2213_s27 = scalar_lea.hbm %s3027_s17, 16 }
  0x8c   :  { %p2214_p6 = scmp.ne.s32.totalorder %s3027_s17, %s2213_s27  ;;  %p2217_p7 = scmp.lt.u32.totalorder %s2213_s27, %s3027_s17 }
  0x8e   :  { %p2219_p8 = pnand %p2217_p7, %p2214_p6 }
  0x90   :  { %2222 = shalt.err (!%p2219_p8)
}
  0x91   :  { %s2223_s2 = scalar_lea.vmem %s200_s29, 16  ;;  %s2227_s0 = scalar_lea.vmem %s200_s29, 32 }
  0x92   :  { %p2224_p9 = scmp.ne.s32.totalorder %s200_s29, %s2223_s2  ;;  %p2228_p10 = scmp.lt.s32.totalorder %s200_s29, %s200_s29 }
  0x93   :  { %p2229_p11 = scmp.lt.s32.totalorder %s2227_s0, %s2223_s2 }
  0x95   :  { %p2230_p12 = por %p2229_p11, %p2228_p10 }
  0x97   :  { %p2231_p13 = pnand %p2230_p12, %p2224_p9 }
  0x99   :  { %2234 = shalt.err (!%p2231_p13)
}
  0x9a   :  { %202 = dma.hbm_to_vmem [thread:$0]  %s3027_s17, 16, %s200_s29, [#allocation24]  }
  0x9b   :  { %s2484_s7 = smov [#allocation2]   ;;  %s2485_s13 = smov [#allocation7]  }
  0x9c   :  { %s45_s30 = sshll.u32 %s2484_s7, 4  ;;  %s64_s5 = sshll.u32 %s2485_s13, 4  ;;  %s46_s30 = int_to_ptr.vmem [resolvable:$true] %s45_s30  ;;  %s65_s5 = int_to_ptr.vmem [resolvable:$true] %s64_s5 }
  0x9d   :  { %s3056_s11 = sld [smem:[#allocation39_spill]] }
  0xa3   :  { %s2235_s4 = scalar_lea.hbm %s3056_s11, 64 }
  0xa4   :  { %p2236_p0 = scmp.ne.s32.totalorder %s3056_s11, %s2235_s4  ;;  %p2239_p1 = scmp.lt.u32.totalorder %s2235_s4, %s3056_s11 }
  0xa6   :  { %p2241_p2 = pnand %p2239_p1, %p2236_p0 }
  0xa8   :  { %2244 = shalt.err (!%p2241_p2)
}
  0xa9   :  { %s2245_s17 = scalar_lea.vmem %s46_s30, 64  ;;  %p2250_p4 = scmp.lt.s32.totalorder %s46_s30, %s46_s30 }
  0xaa   :  { %p2246_p3 = scmp.ne.s32.totalorder %s46_s30, %s2245_s17  ;;  %p2251_p5 = scmp.lt.s32.totalorder %s2245_s17, %s2245_s17 }
  0xac   :  { %p2252_p6 = por %p2251_p5, %p2250_p4 }
  0xae   :  { %p2253_p7 = pnand %p2252_p6, %p2246_p3 }
  0xb0   :  { %2256 = shalt.err (!%p2253_p7)
}
  0xb1   :  { %48 = dma.hbm_to_vmem [thread:$0]  %s3056_s11, 64, %s46_s30, [#allocation3]  }
  0xb2   :  { %s3057_s15 = sld [smem:[#allocation41_spill]] }
  0xb8   :  { %s2257_s28 = scalar_lea.hbm %s3057_s15, 1024 }
  0xb9   :  { %p2258_p8 = scmp.ne.s32.totalorder %s3057_s15, %s2257_s28  ;;  %p2261_p9 = scmp.lt.u32.totalorder %s2257_s28, %s3057_s15 }
  0xbb   :  { %p2263_p10 = pnand %p2261_p9, %p2258_p8 }
  0xbd   :  { %2266 = shalt.err (!%p2263_p10)
}
  0xbe   :  { %s2267_s4 = scalar_lea.vmem %s65_s5, 1024  ;;  %p2272_p12 = scmp.lt.s32.totalorder %s65_s5, %s65_s5 }
  0xbf   :  { %p2268_p11 = scmp.ne.s32.totalorder %s65_s5, %s2267_s4  ;;  %p2273_p13 = scmp.lt.s32.totalorder %s2267_s4, %s2267_s4 }
  0xc1   :  { %p2274_p0 = por %p2273_p13, %p2272_p12 }
  0xc3   :  { %p2275_p1 = pnand %p2274_p0, %p2268_p11 }
  0xc5   :  { %2278 = shalt.err (!%p2275_p1)
}
  0xc6   :  { %70 = dma.hbm_to_vmem [thread:$0]  %s3057_s15, 1024, %s65_s5, [#allocation6], %s2478_s6, %s2478_s6, %s2479_s25  }
  0xc7   :  { %s2486_s27 = smov [#allocation10]   ;;  %s2487_s8 = smov [#allocation13]  }
  0xc8   :  { %s92_s1 = sshll.u32 %s2486_s27, 4  ;;  %s120_s24 = sshll.u32 %s2487_s8, 4  ;;  %s93_s1 = int_to_ptr.vmem [resolvable:$true] %s92_s1  ;;  %s121_s24 = int_to_ptr.vmem [resolvable:$true] %s120_s24 }
  0xc9   :  { %s3058_s23 = sld [smem:[#allocation45_spill]] }
  0xcf   :  { %s2279_s2 = scalar_lea.hbm %s3058_s23, 1024 }
  0xd0   :  { %p2280_p2 = scmp.ne.s32.totalorder %s3058_s23, %s2279_s2  ;;  %p2283_p3 = scmp.lt.u32.totalorder %s2279_s2, %s3058_s23 }
  0xd2   :  { %p2285_p4 = pnand %p2283_p3, %p2280_p2 }
  0xd4   :  { %2288 = shalt.err (!%p2285_p4)
}
  0xd5   :  { %s2289_s5 = scalar_lea.vmem %s93_s1, 1024  ;;  %p2294_p6 = scmp.lt.s32.totalorder %s93_s1, %s93_s1 }
  0xd6   :  { %p2290_p5 = scmp.ne.s32.totalorder %s93_s1, %s2289_s5  ;;  %p2295_p7 = scmp.lt.s32.totalorder %s2289_s5, %s2289_s5 }
  0xd8   :  { %p2296_p8 = por %p2295_p7, %p2294_p6 }
  0xda   :  { %p2297_p9 = pnand %p2296_p8, %p2290_p5 }
  0xdc   :  { %2300 = shalt.err (!%p2297_p9)
}
  0xdd   :  { %98 = dma.hbm_to_vmem [thread:$0]  %s3058_s23, 1024, %s93_s1, [#allocation9], %s2478_s6, %s2478_s6, %s2479_s25  }
  0xde   :  { %s2301_s30 = scalar_lea.hbm %s3020_s10, 1024 }
  0xdf   :  { %p2302_p10 = scmp.ne.s32.totalorder %s3020_s10, %s2301_s30  ;;  %p2305_p11 = scmp.lt.u32.totalorder %s2301_s30, %s3020_s10 }
  0xe1   :  { %p2307_p12 = pnand %p2305_p11, %p2302_p10 }
  0xe3   :  { %2310 = shalt.err (!%p2307_p12)
}
  0xe4   :  { %s2311_s29 = scalar_lea.vmem %s121_s24, 1024  ;;  %p2316_p0 = scmp.lt.s32.totalorder %s121_s24, %s121_s24 }
  0xe5   :  { %p2312_p13 = scmp.ne.s32.totalorder %s121_s24, %s2311_s29  ;;  %p2317_p1 = scmp.lt.s32.totalorder %s2311_s29, %s2311_s29 }
  0xe7   :  { %p2318_p2 = por %p2317_p1, %p2316_p0 }
  0xe9   :  { %p2319_p3 = pnand %p2318_p2, %p2312_p13 }
  0xeb   :  { %2322 = shalt.err (!%p2319_p3)
}
  0xec   :  { %126 = dma.hbm_to_vmem [thread:$0]  %s3020_s10, 1024, %s121_s24, [#allocation12], %s2478_s6, %s2478_s6, %s2479_s25  }
  0xed   :  { %s2488_s2 = smov [#allocation16]   ;;  %s2489_s28 = smov [#allocation19]  }
  0xee   :  { %s142_s0 = sshll.u32 %s2488_s2, 4  ;;  %s164_s7 = sshll.u32 %s2489_s28, 4  ;;  %s143_s0 = int_to_ptr.vmem [resolvable:$true] %s142_s0  ;;  %s165_s7 = int_to_ptr.vmem [resolvable:$true] %s164_s7 }
  0xef   :  { %s2323_s15 = scalar_lea.hbm %s3022_s12, 1024 }
  0xf0   :  { %p2324_p4 = scmp.ne.s32.totalorder %s3022_s12, %s2323_s15  ;;  %p2327_p5 = scmp.lt.u32.totalorder %s2323_s15, %s3022_s12 }
  0xf2   :  { %p2329_p6 = pnand %p2327_p5, %p2324_p4 }
  0xf4   :  { %2332 = shalt.err (!%p2329_p6)
}
  0xf5   :  { %s2333_s10 = scalar_lea.vmem %s143_s0, 1024  ;;  %p2338_p8 = scmp.lt.s32.totalorder %s143_s0, %s143_s0 }
  0xf6   :  { %p2334_p7 = scmp.ne.s32.totalorder %s143_s0, %s2333_s10  ;;  %p2339_p9 = scmp.lt.s32.totalorder %s2333_s10, %s2333_s10 }
  0xf8   :  { %p2340_p10 = por %p2339_p9, %p2338_p8 }
  0xfa   :  { %p2341_p11 = pnand %p2340_p10, %p2334_p7 }
  0xfc   :  { %2344 = shalt.err (!%p2341_p11)
}
  0xfd   :  { %148 = dma.hbm_to_vmem [thread:$0]  %s3022_s12, 1024, %s143_s0, [#allocation15], %s2478_s6, %s2478_s6, %s2479_s25  }
  0xfe   :  { %s2345_s17 = scalar_lea.hbm %s3024_s14, 1024 }
  0xff   :  { %p2346_p12 = scmp.ne.s32.totalorder %s3024_s14, %s2345_s17  ;;  %p2349_p13 = scmp.lt.u32.totalorder %s2345_s17, %s3024_s14 }
 0x101   :  { %p2351_p0 = pnand %p2349_p13, %p2346_p12 }
 0x103   :  { %2354 = shalt.err (!%p2351_p0)
}
 0x104   :  { %s2355_s28 = scalar_lea.vmem %s165_s7, 1024  ;;  %p2360_p2 = scmp.lt.s32.totalorder %s165_s7, %s165_s7 }
 0x105   :  { %p2356_p1 = scmp.ne.s32.totalorder %s165_s7, %s2355_s28  ;;  %p2361_p3 = scmp.lt.s32.totalorder %s2355_s28, %s2355_s28 }
 0x107   :  { %p2362_p4 = por %p2361_p3, %p2360_p2 }
 0x109   :  { %p2363_p5 = pnand %p2362_p4, %p2356_p1 }
 0x10b   :  { %2366 = shalt.err (!%p2363_p5)
}
 0x10c   :  { %170 = dma.hbm_to_vmem [thread:$0]  %s3024_s14, 1024, %s165_s7, [#allocation18], %s2478_s6, %s2478_s6, %s2479_s25  }
 0x10d   :  { %s2490_s13 = smov [#allocation22]   ;;  %s2491_s15 = smov [#allocation25]  }
 0x10e   :  { %s186_s5 = sshll.u32 %s2490_s13, 4  ;;  %s212_s3 = sshll.u32 %s2491_s15, 4  ;;  %s187_s5 = int_to_ptr.vmem [resolvable:$true] %s186_s5  ;;  %s213_s3 = int_to_ptr.vmem [resolvable:$true] %s212_s3 }
 0x10f   :  { %s2367_s30 = scalar_lea.hbm %s3026_s16, 1024 }
 0x110   :  { %p2368_p6 = scmp.ne.s32.totalorder %s3026_s16, %s2367_s30  ;;  %p2371_p7 = scmp.lt.u32.totalorder %s2367_s30, %s3026_s16 }
 0x112   :  { %p2373_p8 = pnand %p2371_p7, %p2368_p6 }
 0x114   :  { %2376 = shalt.err (!%p2373_p8)
}
 0x115   :  { %s2377_s14 = scalar_lea.vmem %s187_s5, 1024  ;;  %p2382_p10 = scmp.lt.s32.totalorder %s187_s5, %s187_s5 }
 0x116   :  { %p2378_p9 = scmp.ne.s32.totalorder %s187_s5, %s2377_s14  ;;  %p2383_p11 = scmp.lt.s32.totalorder %s2377_s14, %s2377_s14 }
 0x118   :  { %p2384_p12 = por %p2383_p11, %p2382_p10 }
 0x11a   :  { %p2385_p13 = pnand %p2384_p12, %p2378_p9 }
 0x11c   :  { %2388 = shalt.err (!%p2385_p13)
}
 0x11d   :  { %192 = dma.hbm_to_vmem [thread:$0]  %s3026_s16, 1024, %s187_s5, [#allocation21], %s2478_s6, %s2478_s6, %s2479_s25  }
 0x11e   :  { %s2389_s1 = scalar_lea.hbm %s3030_s20, 1024 }
 0x11f   :  { %p2390_p0 = scmp.ne.s32.totalorder %s3030_s20, %s2389_s1  ;;  %p2393_p1 = scmp.lt.u32.totalorder %s2389_s1, %s3030_s20 }
 0x121   :  { %p2395_p2 = pnand %p2393_p1, %p2390_p0 }
 0x123   :  { %2398 = shalt.err (!%p2395_p2)
}
 0x124   :  { %s2399_s0 = scalar_lea.vmem %s213_s3, 1024  ;;  %p2404_p4 = scmp.lt.s32.totalorder %s213_s3, %s213_s3 }
 0x125   :  { %p2400_p3 = scmp.ne.s32.totalorder %s213_s3, %s2399_s0  ;;  %p2405_p5 = scmp.lt.s32.totalorder %s2399_s0, %s2399_s0 }
 0x127   :  { %p2406_p6 = por %p2405_p5, %p2404_p4 }
 0x129   :  { %p2407_p7 = pnand %p2406_p6, %p2400_p3 }
 0x12b   :  { %2410 = shalt.err (!%p2407_p7)
}
 0x12c   :  { %218 = dma.hbm_to_vmem [thread:$0]  %s3030_s20, 1024, %s213_s3, [#allocation24], %s2478_s6, %s2478_s6, %s2479_s25  }
 0x12d   :  { %s2492_s5 = smov [#allocation26]   ;;  %s2411_s30 = scalar_lea.hbm %s3032_s22, 1024 }
 0x12e   :  { %s226_s15 = sshll.u32 %s2492_s5, 4  ;;  %p2412_p8 = scmp.ne.s32.totalorder %s3032_s22, %s2411_s30  ;;  %s227_s15 = int_to_ptr.vmem [resolvable:$true] %s226_s15 }
 0x12f   :  { %p2415_p9 = scmp.lt.u32.totalorder %s2411_s30, %s3032_s22 }
 0x131   :  { %p2417_p10 = pnand %p2415_p9, %p2412_p8 }
 0x133   :  { %2420 = shalt.err (!%p2417_p10)
}
 0x134   :  { %s2421_s14 = scalar_lea.vmem %s227_s15, 1024  ;;  %p2426_p12 = scmp.lt.s32.totalorder %s227_s15, %s227_s15 }
 0x135   :  { %p2422_p11 = scmp.ne.s32.totalorder %s227_s15, %s2421_s14  ;;  %p2427_p13 = scmp.lt.s32.totalorder %s2421_s14, %s2421_s14 }
 0x137   :  { %p2428_p0 = por %p2427_p13, %p2426_p12 }
 0x139   :  { %p2429_p1 = pnand %p2428_p0, %p2422_p11 }
 0x13b   :  { %2432 = shalt.err (!%p2429_p1)
}
 0x13c   :  { %232 = dma.hbm_to_vmem [thread:$0]  %s3032_s22, 1024, %s227_s15, [#allocation27], %s2478_s6, %s2478_s6, %s2479_s25  }
 0x13d   :  { %2455 = dma.done.wait [#allocation3], 64  }
 0x13e   :  { %2456 = vsyncadd [#allocation3], 4294967232 }
 0x13f   :  { %2457 = dma.done.wait [#allocation6], 1152  }
 0x140   :  { %2458 = vsyncadd [#allocation6], 4294966144 }
 0x141   :  { %2459 = dma.done.wait [#allocation9], 2048  }
 0x142   :  { %2460 = vsyncadd [#allocation9], 4294965248 }
 0x143   :  { %2461 = dma.done.wait [#allocation12], 2048  }
 0x144   :  { %2462 = vsyncadd [#allocation12], 4294965248 }
 0x145   :  { %2463 = dma.done.wait [#allocation15], 1040  }
 0x146   :  { %2464 = vsyncadd [#allocation15], 4294966256 }
 0x147   :  { %2465 = dma.done.wait [#allocation18], 1040  }
 0x148   :  { %2466 = vsyncadd [#allocation18], 4294966256 }
 0x149   :  { %2467 = dma.done.wait [#allocation21], 1040  }
 0x14a   :  { %2468 = vsyncadd [#allocation21], 4294966256 }
 0x14b   :  { %2469 = dma.done.wait [#allocation24], 1040  }
 0x14c   :  { %2470 = vsyncadd [#allocation24], 4294966256 }
 0x14d   :  { %2471 = dma.done.wait [#allocation27], 1024  }
 0x14e   :  { %2472 = vsyncadd [#allocation27], 4294966272  ;;  %v2493_v0 = vmov 0.0   ;;  %vm2494_vm0 = vmmov 0   ;;  %v1991_v1 = vld [vmem:[#allocation7] sm:$0xff]   ;;  %v1992_v2 = vld [vmem:[#allocation7 + $0x8] sm:$0xff]  }
 0x14f   :  { %1750 = vmatprep.subr.bf16.mxu0 %v2493_v0  ;;  %1766 = vmatprep.mubr.msk.bf16.mxu0 %vm2494_vm0, %v2493_v0  ;;  %v1993_v3 = vld [vmem:[#allocation7 + $0x10] sm:$0xff]   ;;  %v1999_v4 = vld [vmem:[#allocation8] sm:$0xff]   ;;  %v1994_v5 = vld [vmem:[#allocation7 + $0x18] sm:$0xff]   ;;  %s3059_s25 = sld [smem:[#allocation42_spill]]  ;;  %s3060_s17 = sld [smem:[#allocation44_spill]] }
 0x150   :  { %1770 = vmatprep.subr.bf16.mxu1 %v2493_v0  ;;  %1786 = vmatprep.mubr.msk.bf16.mxu1 %vm2494_vm0, %v2493_v0  ;;  %v2000_v6 = vld [vmem:[#allocation8 + $0x8] sm:$0xff]   ;;  %v1995_v7 = vld [vmem:[#allocation7 + $0x20] sm:$0xff]   ;;  %v2001_v8 = vld [vmem:[#allocation8 + $0x10] sm:$0xff]   ;;  %s3061_s23 = sld [smem:[#allocation46_spill]]  ;;  %s3062_s7 = sld [smem:[#allocation48_spill]] }
 0x151   :  { %1751 = vmatpush3.bf16.msra.mxu0 %v1991_v1  ;;  %1771 = vmatpush3.bf16.msra.mxu1 %v1999_v4  ;;  %v1996_v9 = vld [vmem:[#allocation7 + $0x28] sm:$0xff]   ;;  %v2002_v10 = vld [vmem:[#allocation8 + $0x18] sm:$0xff]   ;;  %v1997_v11 = vld [vmem:[#allocation7 + $0x30] sm:$0xff]   ;;  %s2495_s8 = smov [#allocation28]  }
 0x152   :  { %1752 = vmatprep.subr.bf16.mxu0 %v2493_v0  ;;  %1772 = vmatprep.subr.bf16.mxu1 %v2493_v0  ;;  %v2003_v12 = vld [vmem:[#allocation8 + $0x20] sm:$0xff]   ;;  %v1998_v13 = vld [vmem:[#allocation7 + $0x38] sm:$0xff]   ;;  %v2004_v14 = vld [vmem:[#allocation8 + $0x28] sm:$0xff]  }
 0x153   :  { %v284_v15 = vld [vmem:[#allocation2] sm:$0xf]  ;;  %v2006_v17 = vld [vmem:[#allocation8 + $0x38] sm:$0xff]   ;;  %v2007_v18 = vld [vmem:[#allocation10] sm:$0xff]  }
 0x154   :  { %v2005_v16 = vld [vmem:[#allocation8 + $0x30] sm:$0xff]   ;;  %v2008_v19 = vld [vmem:[#allocation10 + $0x8] sm:$0xff]   ;;  %v2010_v21 = vld [vmem:[#allocation10 + $0x18] sm:$0xff]  }
 0x155   :  { %1753 = vmatpush3.bf16.msra.mxu0 %v1992_v2  ;;  %1773 = vmatpush3.bf16.msra.mxu1 %v2000_v6  ;;  %v2009_v20 = vld [vmem:[#allocation10 + $0x10] sm:$0xff]   ;;  %v2011_v22 = vld [vmem:[#allocation10 + $0x20] sm:$0xff]   ;;  %v2012_v23 = vld [vmem:[#allocation10 + $0x28] sm:$0xff]  }
 0x156   :  { %1754 = vmatprep.subr.bf16.mxu0 %v2493_v0  ;;  %1774 = vmatprep.subr.bf16.mxu1 %v2493_v0  ;;  %v1552_v24 = vld [vmem:[%s3059_s25] ss:$0 sm:$0xff]  ;;  %v2014_v33 = vld [vmem:[#allocation10 + $0x38] sm:$0xff]   ;;  %v2015_v34 = vld [vmem:[#allocation11] sm:$0xff]  }
 0x157   :  { %v2013_v32 = vld [vmem:[#allocation10 + $0x30] sm:$0xff]   ;;  %v2016_v35 = vld [vmem:[#allocation11 + $0x8] sm:$0xff]   ;;  %v2018_v37 = vld [vmem:[#allocation11 + $0x18] sm:$0xff]  }
 0x158   :  { %v2017_v36 = vld [vmem:[#allocation11 + $0x10] sm:$0xff]   ;;  %v2019_v38 = vld [vmem:[#allocation11 + $0x20] sm:$0xff]   ;;  %v2020_v39 = vld [vmem:[#allocation11 + $0x28] sm:$0xff]  }
 0x159   :  { %1755 = vmatpush3.bf16.msra.mxu0 %v1993_v3  ;;  %1775 = vmatpush3.bf16.msra.mxu1 %v2001_v8  ;;  %v1561_v40 = vld [vmem:[%s3060_s17] ss:$0 sm:$0xff]  ;;  %v2022_v49 = vld [vmem:[#allocation11 + $0x38] sm:$0xff]   ;;  %v2023_v50 = vld [vmem:[#allocation13] sm:$0xff]   ;;  %s1535_s17 = sshll.u32 %s2495_s8, 4  ;;  %s1536_s17 = int_to_ptr.vmem [resolvable:$true] %s1535_s17 }
 0x15a   :  { %1756 = vmatprep.subr.bf16.mxu0 %v2493_v0  ;;  %1776 = vmatprep.subr.bf16.mxu1 %v2493_v0  ;;  %v2021_v48 = vld [vmem:[#allocation11 + $0x30] sm:$0xff]   ;;  %v2025_v51 = vld [vmem:[#allocation13 + $0x8] sm:$0xff]   ;;  %v2029_v53 = vld [vmem:[#allocation13 + $0x18] sm:$0xff]   ;;  %p2438_p3 = scmp.lt.s32.totalorder %s1536_s17, %s1536_s17 }
 0x15b   :  { %v2027_v52 = vld [vmem:[#allocation13 + $0x10] sm:$0xff]   ;;  %v2031_v54 = vld [vmem:[#allocation13 + $0x20] sm:$0xff]   ;;  %v2033_v55 = vld [vmem:[#allocation13 + $0x28] sm:$0xff]  }
 0x15c   :  { %v1570_v56 = vld [vmem:[%s3061_s23] ss:$0 sm:$0xff]  ;;  %v2024_v63 = vld [vmem:[#allocation16] sm:$0xff]   ;;  %v2026_v2 = vld [vmem:[#allocation16 + $0x8] sm:$0xff]  }
 0x15d   :  { %1757 = vmatpush3.bf16.msra.mxu0 %v1994_v5  ;;  %1777 = vmatpush3.bf16.msra.mxu1 %v2002_v10  ;;  %v2028_v3 = vld [vmem:[#allocation16 + $0x10] sm:$0xff]   ;;  %v2030_v4 = vld [vmem:[#allocation16 + $0x18] sm:$0xff]   ;;  %v2032_v5 = vld [vmem:[#allocation16 + $0x20] sm:$0xff]  }
 0x15e   :  { %1758 = vmatprep.subr.bf16.mxu0 %v2493_v0  ;;  %1778 = vmatprep.subr.bf16.mxu1 %v2493_v0  ;;  %v2034_v6 = vld [vmem:[#allocation16 + $0x28] sm:$0xff]   ;;  %v2036_v8 = vld [vmem:[#allocation16 + $0x30] sm:$0xff]   ;;  %v2038_v10 = vld [vmem:[#allocation16 + $0x38] sm:$0xff]  }
 0x161   :  { %1759 = vmatpush3.bf16.msra.mxu0 %v1995_v7  ;;  %1779 = vmatpush3.bf16.msra.mxu1 %v2003_v12  ;;  %v2035_v7 = vld [vmem:[#allocation13 + $0x30] sm:$0xff]  }
 0x162   :  { %1760 = vmatprep.subr.bf16.mxu0 %v2493_v0  ;;  %1780 = vmatprep.subr.bf16.mxu1 %v2493_v0 }
 0x165   :  { %1761 = vmatpush3.bf16.msra.mxu0 %v1996_v9  ;;  %1781 = vmatpush3.bf16.msra.mxu1 %v2004_v14  ;;  %v2037_v9 = vld [vmem:[#allocation13 + $0x38] sm:$0xff]  }
 0x166   :  { %1762 = vmatprep.subr.bf16.mxu0 %v2493_v0  ;;  %1782 = vmatprep.subr.bf16.mxu1 %v2493_v0 }
 0x169   :  { %1763 = vmatpush3.bf16.msra.mxu0 %v1997_v11  ;;  %1783 = vmatpush3.bf16.msra.mxu1 %v2005_v16  ;;  %v1579_v11 = vld [vmem:[%s3019_s9] ss:$0 sm:$0xff] }
 0x16a   :  { %1764 = vmatprep.subr.bf16.mxu0 %v2493_v0  ;;  %1784 = vmatprep.subr.bf16.mxu1 %v2493_v0 }
 0x16d   :  { %1765 = vmatpush3.bf16.msra.mxu0 %v1998_v13  ;;  %1785 = vmatpush3.bf16.msra.mxu1 %v2006_v17 }
 0x16e   :  { %1790 = vmatprep.subr.bf16.mxu0 %v2493_v0  ;;  %1810 = vmatprep.subr.bf16.mxu1 %v2493_v0 }
 0x170   :  { %1767 = vmatmul.mubr.bf16.vlgmr.msra.gmra.mrb[0].mxu0 %v284_v15 }
 0x171   :  { %1806 = vmatprep.mubr.msk.bf16.mxu0 %vm2494_vm0, %v2493_v0  ;;  %1791 = vmatpush3.bf16.msra.mxu0 %v2007_v18  ;;  %v2039_v18 = vld [vmem:[#allocation19] sm:$0xff]  }
 0x172   :  { %1792 = vmatprep.subr.bf16.mxu0 %v2493_v0 }
 0x175   :  { %1793 = vmatpush3.bf16.msra.mxu0 %v2008_v19 }
 0x176   :  { %1794 = vmatprep.subr.bf16.mxu0 %v2493_v0 }
 0x179   :  { %1795 = vmatpush3.bf16.msra.mxu0 %v2009_v20  ;;  %v2040_v20 = vld [vmem:[#allocation19 + $0x8] sm:$0xff]  }
 0x17a   :  { %1796 = vmatprep.subr.bf16.mxu0 %v2493_v0 }
 0x17d   :  { %1797 = vmatpush3.bf16.msra.mxu0 %v2010_v21  ;;  %v2041_v21 = vld [vmem:[#allocation19 + $0x10] sm:$0xff]  }
 0x17e   :  { %1798 = vmatprep.subr.bf16.mxu0 %v2493_v0 }
 0x181   :  { %1799 = vmatpush3.bf16.msra.mxu0 %v2011_v22  ;;  %v2042_v22 = vld [vmem:[#allocation19 + $0x18] sm:$0xff]  }
 0x182   :  { %1800 = vmatprep.subr.bf16.mxu0 %v2493_v0 }
 0x185   :  { %1801 = vmatpush3.bf16.msra.mxu0 %v2012_v23  ;;  %v2043_v23 = vld [vmem:[#allocation19 + $0x20] sm:$0xff]  }
 0x186   :  { %1802 = vmatprep.subr.bf16.mxu0 %v2493_v0 }
 0x189   :  { %1803 = vmatpush3.bf16.msra.mxu0 %v2013_v32  ;;  %v2052_v32 = vld [vmem:[#allocation22 + $0x28] sm:$0xff]  }
 0x18a   :  { %1804 = vmatprep.subr.bf16.mxu0 %v2493_v0 }
 0x18d   :  { %1805 = vmatpush3.bf16.msra.mxu0 %v2014_v33  ;;  %v1597_v33 = vld [vmem:[#allocation17] ss:$0 sm:$0xff] }
 0x18e   :  { %1830 = vmatprep.subr.bf16.mxu0 %v2493_v0 }
 0x243   :  { %v390_v25 = vpop.f32.mrb[0].mxu0 }
 0x244   :  { %v391_v26 = vadd.f32 %v1552_v24, %v390_v25  ;;  %v1768_v27 = vpop.f32.mrb[1].mxu0  ;;  %v2044_v24 = vld [vmem:[#allocation19 + $0x28] sm:$0xff]   ;;  %v2045_v25 = vld [vmem:[#allocation19 + $0x30] sm:$0xff]  }
 0x245   :  { %v393_v28 = vpop.f32.mrb[2].mxu0  ;;  %v2047_v27 = vld [vmem:[#allocation22] sm:$0xff]  }
 0x246   :  { %v396_v29 = vmax.f32 %v391_v26, 0.0  ;;  %v1769_v30 = vpop.f32.mrb[3].mxu0  ;;  %v2046_v26 = vld [vmem:[#allocation19 + $0x38] sm:$0xff]   ;;  %v2048_v28 = vld [vmem:[#allocation22 + $0x8] sm:$0xff]  }
 0x247   :  { %v2050_v30 = vld [vmem:[#allocation22 + $0x18] sm:$0xff]  }
 0x248   :  { %v397_v31 = vpack.c.bf16 %v396_v29, %v396_v29  ;;  %v2049_v29 = vld [vmem:[#allocation22 + $0x10] sm:$0xff]  }
 0x24a   :  { %1787 = vmatmul.mubr.bf16.vlgmr.msra.gmra.mrb[0].mxu1 %v397_v31  ;;  %v2051_v31 = vld [vmem:[#allocation22 + $0x20] sm:$0xff]  }
 0x24b   :  { %1826 = vmatprep.mubr.msk.bf16.mxu1 %vm2494_vm0, %v2493_v0  ;;  %1811 = vmatpush3.bf16.msra.mxu1 %v2015_v34 }
 0x24c   :  { %1812 = vmatprep.subr.bf16.mxu1 %v2493_v0 }
 0x24f   :  { %1813 = vmatpush3.bf16.msra.mxu1 %v2016_v35 }
 0x250   :  { %1814 = vmatprep.subr.bf16.mxu1 %v2493_v0 }
 0x253   :  { %1815 = vmatpush3.bf16.msra.mxu1 %v2017_v36 }
 0x254   :  { %1816 = vmatprep.subr.bf16.mxu1 %v2493_v0 }
 0x257   :  { %1817 = vmatpush3.bf16.msra.mxu1 %v2018_v37 }
 0x258   :  { %1818 = vmatprep.subr.bf16.mxu1 %v2493_v0 }
 0x25b   :  { %1819 = vmatpush3.bf16.msra.mxu1 %v2019_v38 }
 0x25c   :  { %1820 = vmatprep.subr.bf16.mxu1 %v2493_v0 }
 0x25f   :  { %1821 = vmatpush3.bf16.msra.mxu1 %v2020_v39 }
 0x260   :  { %1822 = vmatprep.subr.bf16.mxu1 %v2493_v0 }
 0x263   :  { %1823 = vmatpush3.bf16.msra.mxu1 %v2021_v48 }
 0x264   :  { %1824 = vmatprep.subr.bf16.mxu1 %v2493_v0 }
 0x267   :  { %1825 = vmatpush3.bf16.msra.mxu1 %v2022_v49 }
 0x268   :  { %1850 = vmatprep.subr.bf16.mxu1 %v2493_v0 }
 0x31d   :  { %v503_v41 = vpop.f32.mrb[0].mxu1 }
 0x31e   :  { %v504_v42 = vadd.f32 %v1561_v40, %v503_v41  ;;  %v1788_v43 = vpop.f32.mrb[1].mxu1 }
 0x31f   :  { %v506_v44 = vpop.f32.mrb[2].mxu1 }
 0x320   :  { %v509_v45 = vmax.f32 %v504_v42, 0.0  ;;  %v1789_v46 = vpop.f32.mrb[3].mxu1  ;;  %v1588_v44 = vld [vmem:[#allocation14] ss:$0 sm:$0xff] }
 0x322   :  { %v510_v47 = vpack.c.bf16 %v509_v45, %v509_v45  ;;  %v961_v45 = vld [vmem:[#allocation5] sm:$0xff] }
 0x324   :  { %1807 = vmatmul.mubr.bf16.vlgmr.msra.gmra.mrb[4].mxu0 %v510_v47 }
 0x325   :  { %1846 = vmatprep.mubr.msk.bf16.mxu0 %vm2494_vm0, %v2493_v0  ;;  %1831 = vmatpush3.bf16.msra.mxu0 %v2023_v50 }
 0x326   :  { %1832 = vmatprep.subr.bf16.mxu0 %v2493_v0 }
 0x329   :  { %1833 = vmatpush3.bf16.msra.mxu0 %v2025_v51  ;;  %v2053_v51 = vld [vmem:[#allocation22 + $0x30] sm:$0xff]  }
 0x32a   :  { %1834 = vmatprep.subr.bf16.mxu0 %v2493_v0 }
 0x32d   :  { %1835 = vmatpush3.bf16.msra.mxu0 %v2027_v52  ;;  %v2054_v52 = vld [vmem:[#allocation22 + $0x38] sm:$0xff]  }
 0x32e   :  { %1836 = vmatprep.subr.bf16.mxu0 %v2493_v0 }
 0x331   :  { %1837 = vmatpush3.bf16.msra.mxu0 %v2029_v53  ;;  %v2055_v53 = vld [vmem:[%s3028_s18] sm:$0xff]  }
 0x332   :  { %1838 = vmatprep.subr.bf16.mxu0 %v2493_v0 }
 0x335   :  { %1839 = vmatpush3.bf16.msra.mxu0 %v2031_v54  ;;  %v2056_v54 = vld [vmem:[%s3028_s18 + $0x8] sm:$0xff]  }
 0x336   :  { %1840 = vmatprep.subr.bf16.mxu0 %v2493_v0 }
 0x339   :  { %1841 = vmatpush3.bf16.msra.mxu0 %v2033_v55  ;;  %v2057_v55 = vld [vmem:[%s3028_s18 + $0x10] sm:$0xff]  }
 0x33a   :  { %1842 = vmatprep.subr.bf16.mxu0 %v2493_v0 }
 0x33d   :  { %1843 = vmatpush3.bf16.msra.mxu0 %v2035_v7  ;;  %v2064_v7 = vld [vmem:[#allocation25 + $0x8] sm:$0xff]  }
 0x33e   :  { %1844 = vmatprep.subr.bf16.mxu0 %v2493_v0 }
 0x341   :  { %1845 = vmatpush3.bf16.msra.mxu0 %v2037_v9  ;;  %v2066_v9 = vld [vmem:[#allocation25 + $0x18] sm:$0xff]  }
 0x342   :  { %1870 = vmatprep.subr.bf16.mxu0 %v2493_v0 }
 0x3f7   :  { %v616_v57 = vpop.f32.mrb[4].mxu0 }
 0x3f8   :  { %v617_v58 = vadd.f32 %v1570_v56, %v616_v57  ;;  %v1808_v59 = vpop.f32.mrb[5].mxu0  ;;  %v2058_v56 = vld [vmem:[%s3028_s18 + $0x18] sm:$0xff]   ;;  %v2059_v57 = vld [vmem:[%s3028_s18 + $0x20] sm:$0xff]  }
 0x3f9   :  { %v619_v60 = vpop.f32.mrb[6].mxu0  ;;  %v1606_v59 = vld [vmem:[#allocation20] ss:$0 sm:$0xff] }
 0x3fa   :  { %v622_v61 = vmax.f32 %v617_v58, 0.0  ;;  %v1809_v62 = vpop.f32.mrb[7].mxu0  ;;  %v2060_v58 = vld [vmem:[%s3028_s18 + $0x28] sm:$0xff]  }
 0x3fc   :  { %v623_v1 = vpack.c.bf16 %v622_v61, %v622_v61 }
 0x3fe   :  { %1827 = vmatmul.mubr.bf16.vlgmr.msra.gmra.mrb[4].mxu1 %v623_v1 }
 0x3ff   :  { %1851 = vmatpush3.bf16.msra.mxu1 %v2024_v63  ;;  %1866 = vmatprep.mubr.msk.bf16.mxu1 %vm2494_vm0, %v2493_v0 }
 0x400   :  { %1852 = vmatprep.subr.bf16.mxu1 %v2493_v0 }
 0x403   :  { %1853 = vmatpush3.bf16.msra.mxu1 %v2026_v2 }
 0x404   :  { %1854 = vmatprep.subr.bf16.mxu1 %v2493_v0 }
 0x407   :  { %1855 = vmatpush3.bf16.msra.mxu1 %v2028_v3 }
 0x408   :  { %1856 = vmatprep.subr.bf16.mxu1 %v2493_v0 }
 0x40b   :  { %1857 = vmatpush3.bf16.msra.mxu1 %v2030_v4  ;;  %v2061_v4 = vld [vmem:[%s3028_s18 + $0x30] sm:$0xff]  }
 0x40c   :  { %1858 = vmatprep.subr.bf16.mxu1 %v2493_v0 }
 0x40f   :  { %1859 = vmatpush3.bf16.msra.mxu1 %v2032_v5  ;;  %v2062_v5 = vld [vmem:[%s3028_s18 + $0x38] sm:$0xff]  }
 0x410   :  { %1860 = vmatprep.subr.bf16.mxu1 %v2493_v0 }
 0x413   :  { %1861 = vmatpush3.bf16.msra.mxu1 %v2034_v6  ;;  %v2063_v6 = vld [vmem:[#allocation25] sm:$0xff]  }
 0x414   :  { %1862 = vmatprep.subr.bf16.mxu1 %v2493_v0 }
 0x417   :  { %1863 = vmatpush3.bf16.msra.mxu1 %v2036_v8  ;;  %v2065_v8 = vld [vmem:[#allocation25 + $0x10] sm:$0xff]  }
 0x418   :  { %1864 = vmatprep.subr.bf16.mxu1 %v2493_v0 }
 0x41b   :  { %1865 = vmatpush3.bf16.msra.mxu1 %v2038_v10  ;;  %v2067_v10 = vld [vmem:[#allocation25 + $0x20] sm:$0xff]  }
 0x41c   :  { %1890 = vmatprep.subr.bf16.mxu1 %v2493_v0 }
 0x4d1   :  { %v729_v12 = vpop.f32.mrb[4].mxu1 }
 0x4d2   :  { %v730_v13 = vadd.f32 %v1579_v11, %v729_v12  ;;  %v1828_v14 = vpop.f32.mrb[5].mxu1  ;;  %v2068_v11 = vld [vmem:[#allocation25 + $0x28] sm:$0xff]   ;;  %v1615_v12 = vld [vmem:[#allocation23] ss:$0 sm:$0xff] }
 0x4d3   :  { %v732_v15 = vpop.f32.mrb[6].mxu1 }
 0x4d4   :  { %v735_v16 = vmax.f32 %v730_v13, 0.0  ;;  %v1829_v17 = vpop.f32.mrb[7].mxu1 }
 0x4d6   :  { %v736_v19 = vpack.c.bf16 %v735_v16, %v735_v16 }
 0x4d8   :  { %1847 = vmatmul.mubr.bf16.vlgmr.msra.gmra.mrb[8].mxu0 %v736_v19  ;;  %1867 = vmatmul.mubr.bf16.vlgmr.msra.gmra.mrb[8].mxu1 %v736_v19 }
 0x4d9   :  { %1871 = vmatpush3.bf16.msra.mxu0 %v2039_v18  ;;  %1886 = vmatprep.mubr.msk.bf16.mxu0 %vm2494_vm0, %v2493_v0 }
 0x4da   :  { %1872 = vmatprep.subr.bf16.mxu0 %v2493_v0  ;;  %1906 = vmatprep.mubr.msk.bf16.mxu1 %vm2494_vm0, %v2493_v0 }
 0x4db   :  { %1891 = vmatpush3.bf16.msra.mxu1 %v2047_v27  ;;  %v2076_v27 = vld [vmem:[#allocation26 + $0x28] sm:$0xff]  }
 0x4dc   :  { %1892 = vmatprep.subr.bf16.mxu1 %v2493_v0 }
 0x4dd   :  { %1873 = vmatpush3.bf16.msra.mxu0 %v2040_v20  ;;  %v2069_v20 = vld [vmem:[#allocation25 + $0x30] sm:$0xff]  }
 0x4de   :  { %1874 = vmatprep.subr.bf16.mxu0 %v2493_v0 }
 0x4df   :  { %1893 = vmatpush3.bf16.msra.mxu1 %v2048_v28  ;;  %v1624_v28 = vld [vmem:[%s3029_s19] ss:$0 sm:$0xff] }
 0x4e0   :  { %1894 = vmatprep.subr.bf16.mxu1 %v2493_v0 }
 0x4e1   :  { %1875 = vmatpush3.bf16.msra.mxu0 %v2041_v21  ;;  %v2070_v21 = vld [vmem:[#allocation25 + $0x38] sm:$0xff]  }
 0x4e2   :  { %1876 = vmatprep.subr.bf16.mxu0 %v2493_v0 }
 0x4e3   :  { %1895 = vmatpush3.bf16.msra.mxu1 %v2049_v29 }
 0x4e4   :  { %1896 = vmatprep.subr.bf16.mxu1 %v2493_v0 }
 0x4e5   :  { %1877 = vmatpush3.bf16.msra.mxu0 %v2042_v22  ;;  %v2071_v22 = vld [vmem:[#allocation26] sm:$0xff]  }
 0x4e6   :  { %1878 = vmatprep.subr.bf16.mxu0 %v2493_v0 }
 0x4e7   :  { %1897 = vmatpush3.bf16.msra.mxu1 %v2050_v30 }
 0x4e8   :  { %1898 = vmatprep.subr.bf16.mxu1 %v2493_v0 }
 0x4e9   :  { %1879 = vmatpush3.bf16.msra.mxu0 %v2043_v23  ;;  %v2072_v23 = vld [vmem:[#allocation26 + $0x8] sm:$0xff]  }
 0x4ea   :  { %1880 = vmatprep.subr.bf16.mxu0 %v2493_v0 }
 0x4eb   :  { %1899 = vmatpush3.bf16.msra.mxu1 %v2051_v31 }
 0x4ec   :  { %1900 = vmatprep.subr.bf16.mxu1 %v2493_v0 }
 0x4ed   :  { %1881 = vmatpush3.bf16.msra.mxu0 %v2044_v24  ;;  %v2073_v24 = vld [vmem:[#allocation26 + $0x10] sm:$0xff]  }
 0x4ee   :  { %1882 = vmatprep.subr.bf16.mxu0 %v2493_v0 }
 0x4ef   :  { %1901 = vmatpush3.bf16.msra.mxu1 %v2052_v32 }
 0x4f0   :  { %1902 = vmatprep.subr.bf16.mxu1 %v2493_v0 }
 0x4f1   :  { %1883 = vmatpush3.bf16.msra.mxu0 %v2045_v25  ;;  %v2074_v25 = vld [vmem:[#allocation26 + $0x18] sm:$0xff]  }
 0x4f2   :  { %1884 = vmatprep.subr.bf16.mxu0 %v2493_v0 }
 0x4f3   :  { %1903 = vmatpush3.bf16.msra.mxu1 %v2053_v51 }
 0x4f4   :  { %1904 = vmatprep.subr.bf16.mxu1 %v2493_v0 }
 0x4f5   :  { %1885 = vmatpush3.bf16.msra.mxu0 %v2046_v26  ;;  %v2075_v26 = vld [vmem:[#allocation26 + $0x20] sm:$0xff]  }
 0x4f6   :  { %1910 = vmatprep.subr.bf16.mxu0 %v2493_v0 }
 0x4f7   :  { %1905 = vmatpush3.bf16.msra.mxu1 %v2054_v52 }
 0x4f8   :  { %1930 = vmatprep.subr.bf16.mxu1 %v2493_v0 }
 0x5ab   :  { %v842_v34 = vpop.f32.mrb[8].mxu0  ;;  %v953_v35 = vpop.f32.mrb[8].mxu1 }
 0x5ac   :  { %v954_v36 = vadd.f32 %v1597_v33, %v953_v35  ;;  %v1848_v37 = vpop.f32.mrb[9].mxu0  ;;  %v1868_v38 = vpop.f32.mrb[9].mxu1  ;;  %v843_v47 = vadd.f32 %v1588_v44, %v842_v34 }
 0x5ad   :  { %v845_v39 = vpop.f32.mrb[10].mxu0  ;;  %v956_v40 = vpop.f32.mrb[10].mxu1  ;;  %v2078_v37 = vld [vmem:[#allocation26 + $0x38] sm:$0xff]   ;;  %v1633_v38 = vld [vmem:[%s3031_s21] ss:$0 sm:$0xff]  ;;  %s2433_s21 = scalar_lea.vmem %s1536_s17, 128 }
 0x5ae   :  { %v959_v41 = vmul.f32 1.442695, %v954_v36  ;;  %v1849_v42 = vpop.f32.mrb[11].mxu0  ;;  %v1869_v43 = vpop.f32.mrb[11].mxu1  ;;  %v2077_v36 = vld [vmem:[#allocation26 + $0x30] sm:$0xff]   ;;  %p2434_p2 = scmp.ne.s32.totalorder %s1536_s17, %s2433_s21  ;;  %p2439_p4 = scmp.lt.s32.totalorder %s2433_s21, %s2433_s21 }
 0x5b0   :  { %2079 = vpow2.f32 %v959_v41  ;;  %p2440_p5 = por %p2439_p4, %p2438_p3 }
 0x5b2   :  { %p2441_p6 = pnand %p2440_p5, %p2434_p2 }
 0x5ba   :  { %v2080_v46 = vpop.eup %2079 }
 0x5bb   :  { %v962_v48 = vmul.f32 %v2080_v46, %v961_v45  ;;  %v1642_v46 = vld [vmem:[%s3062_s7] ss:$0 sm:$0xff] }
 0x5bd   :  { %v963_v49 = vadd.f32 %v962_v48, %v843_v47 }
 0x5bf   :  { %v964_v50 = vpack.c.bf16 %v963_v49, %v963_v49 }
 0x5c1   :  { %1887 = vmatmul.mubr.bf16.vlgmr.msra.gmra.mrb[12].mxu0 %v964_v50 }
 0x5c2   :  { %1926 = vmatprep.mubr.msk.bf16.mxu0 %vm2494_vm0, %v2493_v0  ;;  %1911 = vmatpush3.bf16.msra.mxu0 %v2055_v53 }
 0x5c3   :  { %1912 = vmatprep.subr.bf16.mxu0 %v2493_v0 }
 0x5c6   :  { %1913 = vmatpush3.bf16.msra.mxu0 %v2056_v54 }
 0x5c7   :  { %1914 = vmatprep.subr.bf16.mxu0 %v2493_v0 }
 0x5ca   :  { %1915 = vmatpush3.bf16.msra.mxu0 %v2057_v55 }
 0x5cb   :  { %1916 = vmatprep.subr.bf16.mxu0 %v2493_v0 }
 0x5ce   :  { %1917 = vmatpush3.bf16.msra.mxu0 %v2058_v56 }
 0x5cf   :  { %1918 = vmatprep.subr.bf16.mxu0 %v2493_v0 }
 0x5d2   :  { %1919 = vmatpush3.bf16.msra.mxu0 %v2059_v57 }
 0x5d3   :  { %1920 = vmatprep.subr.bf16.mxu0 %v2493_v0 }
 0x5d6   :  { %1921 = vmatpush3.bf16.msra.mxu0 %v2060_v58 }
 0x5d7   :  { %1922 = vmatprep.subr.bf16.mxu0 %v2493_v0 }
 0x5da   :  { %1923 = vmatpush3.bf16.msra.mxu0 %v2061_v4 }
 0x5db   :  { %1924 = vmatprep.subr.bf16.mxu0 %v2493_v0 }
 0x5de   :  { %1925 = vmatpush3.bf16.msra.mxu0 %v2062_v5 }
 0x5df   :  { %1950 = vmatprep.subr.bf16.mxu0 %v2493_v0 }
 0x694   :  { %v1070_v60 = vpop.f32.mrb[12].mxu0 }
 0x695   :  { %v1071_v61 = vadd.f32 %v1606_v59, %v1070_v60  ;;  %v1888_v62 = vpop.f32.mrb[13].mxu0 }
 0x696   :  { %v1073_v63 = vpop.f32.mrb[14].mxu0 }
 0x697   :  { %v1076_v1 = vmax.f32 %v1071_v61, 0.0  ;;  %v1889_v2 = vpop.f32.mrb[15].mxu0 }
 0x699   :  { %v1077_v3 = vpack.c.bf16 %v1076_v1, %v1076_v1 }
 0x69b   :  { %1907 = vmatmul.mubr.bf16.vlgmr.msra.gmra.mrb[12].mxu1 %v1077_v3 }
 0x69c   :  { %1946 = vmatprep.mubr.msk.bf16.mxu1 %vm2494_vm0, %v2493_v0  ;;  %1931 = vmatpush3.bf16.msra.mxu1 %v2063_v6 }
 0x69d   :  { %1932 = vmatprep.subr.bf16.mxu1 %v2493_v0 }
 0x6a0   :  { %1933 = vmatpush3.bf16.msra.mxu1 %v2064_v7 }
 0x6a1   :  { %1934 = vmatprep.subr.bf16.mxu1 %v2493_v0 }
 0x6a4   :  { %1935 = vmatpush3.bf16.msra.mxu1 %v2065_v8 }
 0x6a5   :  { %1936 = vmatprep.subr.bf16.mxu1 %v2493_v0 }
 0x6a8   :  { %1937 = vmatpush3.bf16.msra.mxu1 %v2066_v9 }
 0x6a9   :  { %1938 = vmatprep.subr.bf16.mxu1 %v2493_v0 }
 0x6ac   :  { %1939 = vmatpush3.bf16.msra.mxu1 %v2067_v10 }
 0x6ad   :  { %1940 = vmatprep.subr.bf16.mxu1 %v2493_v0 }
 0x6b0   :  { %1941 = vmatpush3.bf16.msra.mxu1 %v2068_v11 }
 0x6b1   :  { %1942 = vmatprep.subr.bf16.mxu1 %v2493_v0 }
 0x6b4   :  { %1943 = vmatpush3.bf16.msra.mxu1 %v2069_v20 }
 0x6b5   :  { %1944 = vmatprep.subr.bf16.mxu1 %v2493_v0 }
 0x6b8   :  { %1945 = vmatpush3.bf16.msra.mxu1 %v2070_v21 }
 0x76e   :  { %v1183_v13 = vpop.f32.mrb[12].mxu1 }
 0x76f   :  { %v1184_v14 = vadd.f32 %v1615_v12, %v1183_v13  ;;  %v1908_v15 = vpop.f32.mrb[13].mxu1 }
 0x770   :  { %v1186_v16 = vpop.f32.mrb[14].mxu1 }
 0x771   :  { %v1189_v17 = vmax.f32 %v1184_v14, 0.0  ;;  %v1909_v18 = vpop.f32.mrb[15].mxu1 }
 0x773   :  { %v1190_v19 = vpack.c.bf16 %v1189_v17, %v1189_v17 }
 0x775   :  { %1927 = vmatmul.mubr.bf16.vlgmr.msra.gmra.mrb[16].mxu0 %v1190_v19 }
 0x776   :  { %1966 = vmatprep.mubr.msk.bf16.mxu0 %vm2494_vm0, %v2493_v0  ;;  %1951 = vmatpush3.bf16.msra.mxu0 %v2071_v22 }
 0x777   :  { %1952 = vmatprep.subr.bf16.mxu0 %v2493_v0 }
 0x77a   :  { %1953 = vmatpush3.bf16.msra.mxu0 %v2072_v23 }
 0x77b   :  { %1954 = vmatprep.subr.bf16.mxu0 %v2493_v0 }
 0x77e   :  { %1955 = vmatpush3.bf16.msra.mxu0 %v2073_v24 }
 0x77f   :  { %1956 = vmatprep.subr.bf16.mxu0 %v2493_v0 }
 0x782   :  { %1957 = vmatpush3.bf16.msra.mxu0 %v2074_v25 }
 0x783   :  { %1958 = vmatprep.subr.bf16.mxu0 %v2493_v0 }
 0x786   :  { %1959 = vmatpush3.bf16.msra.mxu0 %v2075_v26 }
 0x787   :  { %1960 = vmatprep.subr.bf16.mxu0 %v2493_v0 }
 0x78a   :  { %1961 = vmatpush3.bf16.msra.mxu0 %v2076_v27 }
 0x78b   :  { %1962 = vmatprep.subr.bf16.mxu0 %v2493_v0 }
 0x78e   :  { %1963 = vmatpush3.bf16.msra.mxu0 %v2077_v36 }
 0x78f   :  { %1964 = vmatprep.subr.bf16.mxu0 %v2493_v0 }
 0x792   :  { %1965 = vmatpush3.bf16.msra.mxu0 %v2078_v37 }
 0x848   :  { %v1296_v29 = vpop.f32.mrb[16].mxu0 }
 0x849   :  { %v1297_v30 = vadd.f32 %v1624_v28, %v1296_v29  ;;  %v1928_v31 = vpop.f32.mrb[17].mxu0 }
 0x84a   :  { %v1299_v32 = vpop.f32.mrb[18].mxu0 }
 0x84b   :  { %v1302_v33 = vmax.f32 %v1297_v30, 0.0  ;;  %v1929_v34 = vpop.f32.mrb[19].mxu0 }
 0x84d   :  { %v1303_v35 = vpack.c.bf16 %v1302_v33, %v1302_v33 }
 0x84f   :  { %1947 = vmatmul.mubr.bf16.vlgmr.msra.gmra.mrb[16].mxu1 %v1303_v35 }
 0x922   :  { %v1409_v39 = vpop.f32.mrb[16].mxu1 }
 0x923   :  { %v1410_v40 = vadd.f32 %v1633_v38, %v1409_v39  ;;  %v1948_v41 = vpop.f32.mrb[17].mxu1 }
 0x924   :  { %v1412_v42 = vpop.f32.mrb[18].mxu1 }
 0x925   :  { %v1415_v43 = vmax.f32 %v1410_v40, 0.0  ;;  %v1949_v44 = vpop.f32.mrb[19].mxu1 }
 0x927   :  { %v1416_v45 = vpack.c.bf16 %v1415_v43, %v1415_v43 }
 0x929   :  { %1967 = vmatmul.mubr.bf16.vlgmr.msra.gmra.mrb[20].mxu0 %v1416_v45 }
 0x9fc   :  { %v1522_v0 = vpop.f32.mrb[20].mxu0 }
 0x9fd   :  { %v1523_v47 = vadd.f32 %v1642_v46, %v1522_v0  ;;  %v1968_v48 = vpop.f32.mrb[21].mxu0 }
 0x9fe   :  { %v1525_v49 = vpop.f32.mrb[22].mxu0 }
 0x9ff   :  { %1528 = vst [vmem:[#allocation28] sm:$0xff] %v1523_v47  ;;  %v1969_v50 = vpop.f32.mrb[23].mxu0 }
 0xa00   :  { %2444 = shalt.err (!%p2441_p6)
}
 0xa01   :  { %s3063_s23 = sld [smem:[#allocation49_spill]] }
 0xa07   :  { %s2445_s2 = scalar_lea.hbm %s3063_s23, 128 }
 0xa08   :  { %p2446_p7 = scmp.ne.s32.totalorder %s3063_s23, %s2445_s2  ;;  %p2449_p8 = scmp.lt.u32.totalorder %s2445_s2, %s3063_s23 }
 0xa0a   :  { %p2451_p9 = pnand %p2449_p8, %p2446_p7 }
 0xa0c   :  { %2454 = shalt.err (!%p2451_p9)
}
 0xa0d   :  { %1538 = dma.vmem_to_hbm [thread:$0]  %s1536_s17, 128, %s3063_s23, [#allocation4]  }
 0xa0e   :  { %2473 = dma.done.wait [#allocation4], 128  }
 0xa0f   :  { %2474 = vsyncadd [#allocation4], 4294967168 }
 0xa10   :  { %1542 = vsyncpa [#allocation3], 1 }
 0xa11   :  { %1543 = vsyncpa [#allocation6], 1 }
 0xa12   :  { %1544 = vsyncpa [#allocation9], 1 }
 0xa13   :  { %1545 = vsyncpa [#allocation12], 1 }
 0xa14   :  { %1546 = vsyncpa [#allocation15], 1 }
 0xa15   :  { %1547 = vsyncpa [#allocation18], 1 }
 0xa16   :  { %1548 = vsyncpa [#allocation21], 1 }
 0xa17   :  { %1549 = vsyncpa [#allocation24], 1 }
 0xa18   :  { %1550 = vsyncpa [#allocation27], 1 }
 0xa19   :  { %1551 = vsyncpa [#allocation4], 1 }

</bundles_post_ra>
